<compile_context>
chip_gen: v6e
topology: v6e:2x2x1
jax: 0.10.0
libtpu: 0.0.40
codegen_flags: <defaults>
</compile_context>

<pallas_src>
import functools
import math

import jax
import jax.numpy as jnp
from jax.experimental import pallas as pl
from jax.experimental.pallas import tpu as pltpu


# Corner enumeration order: c = dx*4 + dy*2 + dz
_CORNERS = [(dx, dy, dz) for dx in (0, 1) for dy in (0, 1) for dz in (0, 1)]

_N_CORNER_ROWS = 32   # channel*8 + corner  (4 channels x 8 corners)
_N_META_ROWS = 7      # fx, fy, fz, dirx, diry, dirz, delta
_N_OUT_ROWS = 9       # sdf, r, g, b, density, gx, gy, gz, alpha


def _sdf_field_kernel(corner_ref, meta_ref, out_ref, *, grad_scale, inv_beta,
                      inv_s, cos_anneal_ratio, n_chunks):
    """Per-point math on (8, 128) vreg tiles, looped over 8-sublane chunks.

    corner_ref : (32, G, 128) f32   row = channel*8 + corner (ch 0 = sdf, 1..3 = rgb)
    meta_ref   : ( 7, G, 128) f32   rows: fx, fy, fz, dirx, diry, dirz, delta
    out_ref    : ( 9, G, 128) f32   rows: sdf, r, g, b, density, gx, gy, gz, alpha
    """
    sx, sy, sz = grad_scale

    def chunk_body(j, carry):
        row0 = pl.multiple_of(j * 8, 8)
        s = pl.ds(row0, 8)

        fx = meta_ref[0, s, :]
        fy = meta_ref[1, s, :]
        fz = meta_ref[2, s, :]
        dirx = meta_ref[3, s, :]
        diry = meta_ref[4, s, :]
        dirz = meta_ref[5, s, :]
        delta = meta_ref[6, s, :]

        wx = (1.0 - fx, fx)
        wy = (1.0 - fy, fy)
        wz = (1.0 - fz, fz)
        # Hoist the 12 distinct pairwise products out of the 8-corner loop.
        wyz = [[wy[a] * wz[b] for b in (0, 1)] for a in (0, 1)]
        wxz = [[wx[a] * wz[b] for b in (0, 1)] for a in (0, 1)]
        wxy = [[wx[a] * wy[b] for b in (0, 1)] for a in (0, 1)]

        zero = jnp.zeros_like(fx)
        sdf = zero
        r = zero
        g = zero
        b = zero
        gx = zero
        gy = zero
        gz = zero

        # Trilinear interpolation + analytic d(sdf)/d(grid coord), 8 clamped corners.
        for c, (dx, dy, dz) in enumerate(_CORNERS):
            c_sdf = corner_ref[c, s, :]          # channel 0
            c_r = corner_ref[8 + c, s, :]        # channel 1
            c_g = corner_ref[16 + c, s, :]       # channel 2
            c_b = corner_ref[24 + c, s, :]       # channel 3

            w_yz = wyz[dy][dz]
            w_xz = wxz[dx][dz]
            w_xy = wxy[dx][dy]
            w = wx[dx] * w_yz

            sdf = sdf + w * c_sdf
            r = r + w * c_r
            g = g + w * c_g
            b = b + w * c_b

            gx = gx + (w_yz if dx else -w_yz) * c_sdf
            gy = gy + (w_xz if dy else -w_xz) * c_sdf
            gz = gz + (w_xy if dz else -w_xy) * c_sdf

        # Chain rule: d(grid coord)/d(world point) — compile-time constants.
        grad_x = gx * sx
        grad_y = gy * sy
        grad_z = gz * sz

        # LaplaceDensity: (1/beta)*(0.5 + 0.5*sign(sdf)*expm1(-|sdf|/beta)),
        # fused (cancellation-free) form: one exp, one select.
        e = jnp.exp(-jnp.abs(sdf) * inv_beta)
        density = inv_beta * jnp.where(sdf >= 0.0, 0.5 * e, 1.0 - 0.5 * e)

        # NeuS alpha (get_alpha path, return_alphas=True)
        true_cos = dirx * grad_x + diry * grad_y + dirz * grad_z
        iter_cos = -(jnp.maximum(-true_cos * 0.5 + 0.5, 0.0) * (1.0 - cos_anneal_ratio)
                     + jnp.maximum(-true_cos, 0.0) * cos_anneal_ratio)
        half_step = iter_cos * delta * 0.5
        est_next = sdf + half_step
        est_prev = sdf - half_step
        # sigmoid(x) = 0.5*tanh(0.5*x) + 0.5 — tanh runs on the EUP slot, no divide.
        prev_cdf = 0.5 * jnp.tanh(est_prev * (0.5 * inv_s)) + 0.5
        next_cdf = 0.5 * jnp.tanh(est_next * (0.5 * inv_s)) + 0.5
        alpha = jnp.clip((prev_cdf - next_cdf + 1e-5)
                         * pl.reciprocal(prev_cdf + 1e-5, approx=True), 0.0, 1.0)

        # Every store is a full, unmasked (8, 128) tile.
        out_ref[0, s, :] = sdf
        out_ref[1, s, :] = r
        out_ref[2, s, :] = g
        out_ref[3, s, :] = b
        out_ref[4, s, :] = density
        out_ref[5, s, :] = grad_x
        out_ref[6, s, :] = grad_y
        out_ref[7, s, :] = grad_z
        out_ref[8, s, :] = alpha
        return carry

    jax.lax.fori_loop(0, n_chunks, chunk_body, 0, unroll=min(2, n_chunks))


def sdf_field_forward(points, directions, deltas, feature_volume, *,
                      voxel_shape, pc_range, scale_factor, beta_init,
                      beta_min=1e-4, cos_anneal_ratio=1.0, tile_p=16384):
    assert tile_p % 1024 == 0, "tile_p must be a multiple of 1024 (8 sublanes x 128 lanes)"
    R, S, _ = points.shape
    C, D, H, W = feature_volume.shape            # torch layout (C, Z, Y, X), C = 4
    assert (W, H, D) == tuple(voxel_shape), "voxel_shape must be (X, Y, Z)"
    assert C == 4
    V = D * H * W
    P = R * S

    # --- Tile selection: big blocks to amortize grid overhead (default 16 Ki points,
    # ~3.6 MiB of block data -> ~7 MiB double-buffered: fits v5e's 16 MiB scoped VMEM),
    # but keep >= 2 grid steps when possible so "parallel" shards across v7x's 2 TCs.
    P_1k = ((P + 1023) // 1024) * 1024
    tp = min(tile_p, P_1k)
    if P_1k // tp < 2 and P_1k >= 2048:
        tp = max(1024, ((P_1k // 2) // 1024) * 1024)
    num_tiles = (P + tp - 1) // tp
    P_pad = num_tiles * tp
    lanes_total = P_pad // 128
    g_per_tile = tp // 128
    n_chunks = g_per_tile // 8

    f32 = jnp.float32
    pts = jnp.asarray(points, f32).reshape(P, 3)
    dirs = jnp.asarray(directions, f32).reshape(P, 3)
    dts = jnp.asarray(deltas, f32).reshape(P)

    # Pad the small (<= 28 B/point) per-point arrays BEFORE the gather, so the
    # 128 B/point corner slab comes out of the gather already padded — no jnp.pad /
    # jnp.concatenate relayout of the big slab.
    pad = P_pad - P
    if pad:
        pts = jnp.pad(pts, ((0, pad), (0, 0)))
        dirs = jnp.pad(dirs, ((0, pad), (0, 0)))
        dts = jnp.pad(dts, ((0, pad),))

    pcr = jnp.asarray(pc_range, f32)
    lo, hi = pcr[:3], pcr[3:]
    # world -> grid coords (grid_sample_3d, align_corners=True, border clamp)
    nc = (pts / scale_factor - lo) / (hi - lo)
    gcoord = nc * 2.0 - 1.0
    ix = (gcoord[:, 0] + 1.0) * 0.5 * (W - 1)
    iy = (gcoord[:, 1] + 1.0) * 0.5 * (H - 1)
    iz = (gcoord[:, 2] + 1.0) * 0.5 * (D - 1)
    x0 = jnp.floor(ix)
    y0 = jnp.floor(iy)
    z0 = jnp.floor(iz)
    fx = ix - x0
    fy = iy - y0
    fz = iz - z0

    # Flat row index of each of the 8 (border-clamped) corners, row-major over (z, y, x).
    flats = []
    for dx, dy, dz in _CORNERS:
        cx = jnp.clip(x0 + dx, 0, W - 1).astype(jnp.int32)
        cy = jnp.clip(y0 + dy, 0, H - 1).astype(jnp.int32)
        cz = jnp.clip(z0 + dz, 0, D - 1).astype(jnp.int32)
        flats.append(cz * (H * W) + cy * W + cx)
    flat_idx = jnp.stack(flats, axis=0)                                  # (8, P_pad)

    # XLA gather with the point axis LAST: (C, V) table -> (C, 8, P_pad) == (32, P_pad),
    # row = channel*8 + corner.  No transpose of the dominant corner data.
    vol_flat = jnp.asarray(feature_volume, f32).reshape(C, V)            # (4, V)
    corner = jnp.take(vol_flat, flat_idx, axis=1, mode="clip")           # (4, 8, P_pad)
    corner = corner.reshape(_N_CORNER_ROWS, lanes_total, 128)

    meta = jnp.stack([fx, fy, fz, dirs[:, 0], dirs[:, 1], dirs[:, 2], dts],
                     axis=0).reshape(_N_META_ROWS, lanes_total, 128)

    # Deterministic "nn.Parameter" init baked in as compile-time constants:
    # LaplaceDensity.beta and SingleVarianceNetwork.variance = beta_init * ones(1).
    beta = abs(float(beta_init)) + float(beta_min)                       # get_beta()
    inv_s = min(max(math.exp(10.0 * float(beta_init)), 1e-6), 1e6)       # get_variance()
    sx = (W - 1) / ((float(pc_range[3]) - float(pc_range[0])) * float(scale_factor))
    sy = (H - 1) / ((float(pc_range[4]) - float(pc_range[1])) * float(scale_factor))
    sz = (D - 1) / ((float(pc_range[5]) - float(pc_range[2])) * float(scale_factor))

    kern = functools.partial(
        _sdf_field_kernel,
        grad_scale=(sx, sy, sz),
        inv_beta=1.0 / beta,
        inv_s=float(inv_s),
        cos_anneal_ratio=float(cos_anneal_ratio),
        n_chunks=n_chunks,
    )

    out = pl.pallas_call(
        kern,
        out_shape=jax.ShapeDtypeStruct((_N_OUT_ROWS, lanes_total, 128), f32),
        grid=(num_tiles,),
        in_specs=[
            pl.BlockSpec((_N_CORNER_ROWS, g_per_tile, 128), lambda i: (0, i, 0)),
            pl.BlockSpec((_N_META_ROWS, g_per_tile, 128), lambda i: (0, i, 0)),
        ],
        out_specs=pl.BlockSpec((_N_OUT_ROWS, g_per_tile, 128), lambda i: (0, i, 0)),
        compiler_params=pltpu.CompilerParams(dimension_semantics=("parallel",)),
    )(corner, meta)

    out = out.reshape(_N_OUT_ROWS, P_pad)[:, :P]

    return {
        "rgb": out[1:4].T.reshape(R, S, 3),
        "density": out[4].reshape(R, S, 1),
        "sdf": out[0].reshape(R, S, 1),
        "gradients": out[5:8].T.reshape(R, S, 3),
        "alphas": out[8].reshape(R, S, 1),
    }


def _reference_forward(points, directions, deltas, feature_volume, *,
                       voxel_shape, pc_range, scale_factor, beta_init,
                       beta_min=1e-4, cos_anneal_ratio=1.0):
    """Pure-JAX reference of the same math (mirrors the PyTorch module)."""
    C, D, H, W = feature_volume.shape
    R, S, _ = points.shape
    P = R * S
    pts = jnp.asarray(points, jnp.float32).reshape(P, 3)
    dirs = jnp.asarray(directions, jnp.float32).reshape(P, 3)
    dts = jnp.asarray(deltas, jnp.float32).reshape(P, 1)
    pcr = jnp.asarray(pc_range, jnp.float32)
    nc = (pts / scale_factor - pcr[:3]) / (pcr[3:] - pcr[:3])
    g = nc * 2.0 - 1.0
    ix = (g[:, 0] + 1.0) / 2.0 * (W - 1)
    iy = (g[:, 1] + 1.0) / 2.0 * (H - 1)
    iz = (g[:, 2] + 1.0) / 2.0 * (D - 1)
    x0, y0, z0 = jnp.floor(ix), jnp.floor(iy), jnp.floor(iz)
    fx, fy, fz = ix - x0, iy - y0, iz - z0
    feats = jnp.zeros((C, P), jnp.float32)
    gx = jnp.zeros((P,), jnp.float32)
    gy = jnp.zeros((P,), jnp.float32)
    gz = jnp.zeros((P,), jnp.float32)
    for dx in (0, 1):
        for dy in (0, 1):
            for dz in (0, 1):
                cx = jnp.clip(x0 + dx, 0, W - 1).astype(jnp.int32)
                cy = jnp.clip(y0 + dy, 0, H - 1).astype(jnp.int32)
                cz = jnp.clip(z0 + dz, 0, D - 1).astype(jnp.int32)
                v = feature_volume[:, cz, cy, cx]       # (C, P)
                wx = fx if dx else 1.0 - fx
                wy = fy if dy else 1.0 - fy
                wz = fz if dz else 1.0 - fz
                feats = feats + (wx * wy * wz)[None, :] * v
                gx = gx + (1.0 if dx else -1.0) * (wy * wz) * v[0]
                gy = gy + (1.0 if dy else -1.0) * (wx * wz) * v[0]
                gz = gz + (1.0 if dz else -1.0) * (wx * wy) * v[0]
    sdf = feats[0][:, None]
    rgb = feats[1:4].T
    sx = (W - 1) / ((pc_range[3] - pc_range[0]) * scale_factor)
    sy = (H - 1) / ((pc_range[4] - pc_range[1]) * scale_factor)
    sz = (D - 1) / ((pc_range[5] - pc_range[2]) * scale_factor)
    gradients = jnp.stack([gx * sx, gy * sy, gz * sz], axis=1)
    beta = jnp.abs(jnp.float32(beta_init)) + jnp.float32(beta_min)
    density = (1.0 / beta) * (0.5 + 0.5 * jnp.sign(sdf)
                              * jnp.expm1(-jnp.abs(sdf) / beta))
    inv_s = jnp.clip(jnp.exp(jnp.float32(beta_init) * 10.0), 1e-6, 1e6)
    true_cos = jnp.sum(dirs * gradients, axis=1, keepdims=True)
    iter_cos = -(jnp.maximum(-true_cos * 0.5 + 0.5, 0.0) * (1.0 - cos_anneal_ratio)
                 + jnp.maximum(-true_cos, 0.0) * cos_anneal_ratio)
    est_next = sdf + iter_cos * dts * 0.5
    est_prev = sdf - iter_cos * dts * 0.5
    prev_cdf = 1.0 / (1.0 + jnp.exp(-est_prev * inv_s))
    next_cdf = 1.0 / (1.0 + jnp.exp(-est_next * inv_s))
    alpha = jnp.clip((prev_cdf - next_cdf + 1e-5) / (prev_cdf + 1e-5), 0.0, 1.0)

    def r(x, k):
        return x.reshape(R, S, k)

    return {"rgb": r(rgb, 3), "density": r(density, 1), "sdf": r(sdf, 1),
            "gradients": r(gradients, 3), "alphas": r(alpha, 1)}


if __name__ == "__main__":
    key = jax.random.PRNGKey(0)
    k_vol, k_pts, k_dir, k_del = jax.random.split(key, 4)

    R, S = 8, 160                        # 8 rays x 160 samples = 1280 points -> 2 grid steps
    voxel_shape = (16, 16, 8)            # (X, Y, Z)
    pc_range = (-1.0, -1.0, -0.5, 1.0, 1.0, 0.5)
    scale_factor = 2.0
    beta_init = 0.1
    C = 4                                # channel 0 = sdf, 1..3 = rgb
    X, Y, Z = voxel_shape

    feature_volume = 0.5 * jax.random.normal(k_vol, (C, Z, Y, X), jnp.float32)

    lo = jnp.array(pc_range[:3], jnp.float32) * scale_factor
    hi = jnp.array(pc_range[3:], jnp.float32) * scale_factor
    u = jax.random.uniform(k_pts, (R, S, 3), jnp.float32, 0.05, 0.95)
    points = lo + u * (hi - lo)

    d = jax.random.normal(k_dir, (R, S, 3), jnp.float32)
    directions = d / jnp.linalg.norm(d, axis=-1, keepdims=True)
    deltas = jax.random.uniform(k_del, (R, S, 1), jnp.float32, 0.01, 0.1)

    fwd = jax.jit(lambda p, dr, dl, fv: sdf_field_forward(
        p, dr, dl, fv, voxel_shape=voxel_shape, pc_range=pc_range,
        scale_factor=scale_factor, beta_init=beta_init))

    out = fwd(points, directions, deltas, feature_volume)
    out = jax.block_until_ready(out)

    ref = _reference_forward(points, directions, deltas, feature_volume,
                             voxel_shape=voxel_shape, pc_range=pc_range,
                             scale_factor=scale_factor, beta_init=beta_init)

    tight = dict(atol=1e-4, rtol=1e-3)
    loose = dict(atol=1e-3, rtol=1e-2)   # alphas: approx reciprocal + tanh sigmoid
    for name in ("sdf", "rgb", "density", "gradients", "alphas"):
        tol = loose if name == "alphas" else tight
        assert out[name].shape == ref[name].shape, name
        assert jnp.allclose(out[name], ref[name], **tol), name

    print("KERNEL_OK")
</pallas_src>

<mosaic_0001>
module attributes {stable_mosaic.version = 11 : i64} {
  func.func @_sdf_field_kernel(%arg0: i32, %arg1: memref<32x8x128xf32, #tpu.memory_space<vmem>>, %arg2: memref<7x8x128xf32, #tpu.memory_space<vmem>>, %arg3: memref<9x8x128xf32, #tpu.memory_space<vmem>>) attributes {dimension_semantics = [#tpu.dimension_semantics<parallel>], iteration_bounds = array<i64: 2>, scalar_prefetch = 0 : i64, scratch_operands = 0 : i64, tpu.core_type = #tpu.core_type<tc>, window_params = [{transform_indices = @transform_0, window_bounds = array<i64: 32, 8, 128>}, {transform_indices = @transform_1, window_bounds = array<i64: 7, 8, 128>}, {transform_indices = @transform_2, window_bounds = array<i64: 9, 8, 128>}]} {
    %c0_i32 = arith.constant 0 : i32
    %c8_i32 = arith.constant 8 : i32
    %0 = arith.muli %c0_i32, %c8_i32 : i32
    %1 = tpu.assume_multiple %0, 8 : i32
    %c0 = arith.constant 0 : index
    %2 = arith.index_cast %1 : i32 to index
    %c0_0 = arith.constant 0 : index
    %3 = vector.load %arg2[%c0, %2, %c0_0] : memref<7x8x128xf32, #tpu.memory_space<vmem>>, vector<1x8x128xf32>
    %4 = vector.shape_cast %3 : vector<1x8x128xf32> to vector<8x128xf32>
    %c1 = arith.constant 1 : index
    %5 = arith.index_cast %1 : i32 to index
    %c0_1 = arith.constant 0 : index
    %6 = vector.load %arg2[%c1, %5, %c0_1] : memref<7x8x128xf32, #tpu.memory_space<vmem>>, vector<1x8x128xf32>
    %7 = vector.shape_cast %6 : vector<1x8x128xf32> to vector<8x128xf32>
    %c2 = arith.constant 2 : index
    %8 = arith.index_cast %1 : i32 to index
    %c0_2 = arith.constant 0 : index
    %9 = vector.load %arg2[%c2, %8, %c0_2] : memref<7x8x128xf32, #tpu.memory_space<vmem>>, vector<1x8x128xf32>
    %10 = vector.shape_cast %9 : vector<1x8x128xf32> to vector<8x128xf32>
    %c3 = arith.constant 3 : index
    %11 = arith.index_cast %1 : i32 to index
    %c0_3 = arith.constant 0 : index
    %12 = vector.load %arg2[%c3, %11, %c0_3] : memref<7x8x128xf32, #tpu.memory_space<vmem>>, vector<1x8x128xf32>
    %13 = vector.shape_cast %12 : vector<1x8x128xf32> to vector<8x128xf32>
    %c4 = arith.constant 4 : index
    %14 = arith.index_cast %1 : i32 to index
    %c0_4 = arith.constant 0 : index
    %15 = vector.load %arg2[%c4, %14, %c0_4] : memref<7x8x128xf32, #tpu.memory_space<vmem>>, vector<1x8x128xf32>
    %16 = vector.shape_cast %15 : vector<1x8x128xf32> to vector<8x128xf32>
    %c5 = arith.constant 5 : index
    %17 = arith.index_cast %1 : i32 to index
    %c0_5 = arith.constant 0 : index
    %18 = vector.load %arg2[%c5, %17, %c0_5] : memref<7x8x128xf32, #tpu.memory_space<vmem>>, vector<1x8x128xf32>
    %19 = vector.shape_cast %18 : vector<1x8x128xf32> to vector<8x128xf32>
    %c6 = arith.constant 6 : index
    %20 = arith.index_cast %1 : i32 to index
    %c0_6 = arith.constant 0 : index
    %21 = vector.load %arg2[%c6, %20, %c0_6] : memref<7x8x128xf32, #tpu.memory_space<vmem>>, vector<1x8x128xf32>
    %22 = vector.shape_cast %21 : vector<1x8x128xf32> to vector<8x128xf32>
    %cst = arith.constant 1.000000e+00 : f32
    %23 = vector.broadcast %cst : f32 to vector<8x128xf32>
    %24 = arith.subf %23, %4 : vector<8x128xf32>
    %cst_7 = arith.constant 1.000000e+00 : f32
    %25 = vector.broadcast %cst_7 : f32 to vector<8x128xf32>
    %26 = arith.subf %25, %7 : vector<8x128xf32>
    %cst_8 = arith.constant 1.000000e+00 : f32
    %27 = vector.broadcast %cst_8 : f32 to vector<8x128xf32>
    %28 = arith.subf %27, %10 : vector<8x128xf32>
    %29 = arith.mulf %26, %28 : vector<8x128xf32>
    %30 = arith.mulf %26, %10 : vector<8x128xf32>
    %31 = arith.mulf %7, %28 : vector<8x128xf32>
    %32 = arith.mulf %7, %10 : vector<8x128xf32>
    %33 = arith.mulf %24, %28 : vector<8x128xf32>
    %34 = arith.mulf %24, %10 : vector<8x128xf32>
    %35 = arith.mulf %4, %28 : vector<8x128xf32>
    %36 = arith.mulf %4, %10 : vector<8x128xf32>
    %37 = arith.mulf %24, %26 : vector<8x128xf32>
    %38 = arith.mulf %24, %7 : vector<8x128xf32>
    %39 = arith.mulf %4, %26 : vector<8x128xf32>
    %40 = arith.mulf %4, %7 : vector<8x128xf32>
    %cst_9 = arith.constant 0.000000e+00 : f32
    %41 = vector.broadcast %cst_9 : f32 to vector<8x128xf32>
    %c0_10 = arith.constant 0 : index
    %42 = arith.index_cast %1 : i32 to index
    %c0_11 = arith.constant 0 : index
    %43 = vector.load %arg1[%c0_10, %42, %c0_11] : memref<32x8x128xf32, #tpu.memory_space<vmem>>, vector<1x8x128xf32>
    %44 = vector.shape_cast %43 : vector<1x8x128xf32> to vector<8x128xf32>
    %c8 = arith.constant 8 : index
    %45 = arith.index_cast %1 : i32 to index
    %c0_12 = arith.constant 0 : index
    %46 = vector.load %arg1[%c8, %45, %c0_12] : memref<32x8x128xf32, #tpu.memory_space<vmem>>, vector<1x8x128xf32>
    %47 = vector.shape_cast %46 : vector<1x8x128xf32> to vector<8x128xf32>
    %c16 = arith.constant 16 : index
    %48 = arith.index_cast %1 : i32 to index
    %c0_13 = arith.constant 0 : index
    %49 = vector.load %arg1[%c16, %48, %c0_13] : memref<32x8x128xf32, #tpu.memory_space<vmem>>, vector<1x8x128xf32>
    %50 = vector.shape_cast %49 : vector<1x8x128xf32> to vector<8x128xf32>
    %c24 = arith.constant 24 : index
    %51 = arith.index_cast %1 : i32 to index
    %c0_14 = arith.constant 0 : index
    %52 = vector.load %arg1[%c24, %51, %c0_14] : memref<32x8x128xf32, #tpu.memory_space<vmem>>, vector<1x8x128xf32>
    %53 = vector.shape_cast %52 : vector<1x8x128xf32> to vector<8x128xf32>
    %54 = arith.mulf %24, %29 : vector<8x128xf32>
    %55 = arith.mulf %54, %44 : vector<8x128xf32>
    %56 = arith.addf %41, %55 : vector<8x128xf32>
    %57 = arith.mulf %54, %47 : vector<8x128xf32>
    %58 = arith.addf %41, %57 : vector<8x128xf32>
    %59 = arith.mulf %54, %50 : vector<8x128xf32>
    %60 = arith.addf %41, %59 : vector<8x128xf32>
    %61 = arith.mulf %54, %53 : vector<8x128xf32>
    %62 = arith.addf %41, %61 : vector<8x128xf32>
    %cst_15 = arith.constant 0.000000e+00 : f32
    %63 = vector.broadcast %cst_15 : f32 to vector<8x128xf32>
    %64 = arith.subf %63, %29 : vector<8x128xf32>
    %65 = arith.mulf %64, %44 : vector<8x128xf32>
    %66 = arith.addf %41, %65 : vector<8x128xf32>
    %cst_16 = arith.constant 0.000000e+00 : f32
    %67 = vector.broadcast %cst_16 : f32 to vector<8x128xf32>
    %68 = arith.subf %67, %33 : vector<8x128xf32>
    %69 = arith.mulf %68, %44 : vector<8x128xf32>
    %70 = arith.addf %41, %69 : vector<8x128xf32>
    %cst_17 = arith.constant 0.000000e+00 : f32
    %71 = vector.broadcast %cst_17 : f32 to vector<8x128xf32>
    %72 = arith.subf %71, %37 : vector<8x128xf32>
    %73 = arith.mulf %72, %44 : vector<8x128xf32>
    %74 = arith.addf %41, %73 : vector<8x128xf32>
    %c1_18 = arith.constant 1 : index
    %75 = arith.index_cast %1 : i32 to index
    %c0_19 = arith.constant 0 : index
    %76 = vector.load %arg1[%c1_18, %75, %c0_19] : memref<32x8x128xf32, #tpu.memory_space<vmem>>, vector<1x8x128xf32>
    %77 = vector.shape_cast %76 : vector<1x8x128xf32> to vector<8x128xf32>
    %c9 = arith.constant 9 : index
    %78 = arith.index_cast %1 : i32 to index
    %c0_20 = arith.constant 0 : index
    %79 = vector.load %arg1[%c9, %78, %c0_20] : memref<32x8x128xf32, #tpu.memory_space<vmem>>, vector<1x8x128xf32>
    %80 = vector.shape_cast %79 : vector<1x8x128xf32> to vector<8x128xf32>
    %c17 = arith.constant 17 : index
    %81 = arith.index_cast %1 : i32 to index
    %c0_21 = arith.constant 0 : index
    %82 = vector.load %arg1[%c17, %81, %c0_21] : memref<32x8x128xf32, #tpu.memory_space<vmem>>, vector<1x8x128xf32>
    %83 = vector.shape_cast %82 : vector<1x8x128xf32> to vector<8x128xf32>
    %c25 = arith.constant 25 : index
    %84 = arith.index_cast %1 : i32 to index
    %c0_22 = arith.constant 0 : index
    %85 = vector.load %arg1[%c25, %84, %c0_22] : memref<32x8x128xf32, #tpu.memory_space<vmem>>, vector<1x8x128xf32>
    %86 = vector.shape_cast %85 : vector<1x8x128xf32> to vector<8x128xf32>
    %87 = arith.mulf %24, %30 : vector<8x128xf32>
    %88 = arith.mulf %87, %77 : vector<8x128xf32>
    %89 = arith.addf %56, %88 : vector<8x128xf32>
    %90 = arith.mulf %87, %80 : vector<8x128xf32>
    %91 = arith.addf %58, %90 : vector<8x128xf32>
    %92 = arith.mulf %87, %83 : vector<8x128xf32>
    %93 = arith.addf %60, %92 : vector<8x128xf32>
    %94 = arith.mulf %87, %86 : vector<8x128xf32>
    %95 = arith.addf %62, %94 : vector<8x128xf32>
    %cst_23 = arith.constant 0.000000e+00 : f32
    %96 = vector.broadcast %cst_23 : f32 to vector<8x128xf32>
    %97 = arith.subf %96, %30 : vector<8x128xf32>
    %98 = arith.mulf %97, %77 : vector<8x128xf32>
    %99 = arith.addf %66, %98 : vector<8x128xf32>
    %cst_24 = arith.constant 0.000000e+00 : f32
    %100 = vector.broadcast %cst_24 : f32 to vector<8x128xf32>
    %101 = arith.subf %100, %34 : vector<8x128xf32>
    %102 = arith.mulf %101, %77 : vector<8x128xf32>
    %103 = arith.addf %70, %102 : vector<8x128xf32>
    %104 = arith.mulf %37, %77 : vector<8x128xf32>
    %105 = arith.addf %74, %104 : vector<8x128xf32>
    %c2_25 = arith.constant 2 : index
    %106 = arith.index_cast %1 : i32 to index
    %c0_26 = arith.constant 0 : index
    %107 = vector.load %arg1[%c2_25, %106, %c0_26] : memref<32x8x128xf32, #tpu.memory_space<vmem>>, vector<1x8x128xf32>
    %108 = vector.shape_cast %107 : vector<1x8x128xf32> to vector<8x128xf32>
    %c10 = arith.constant 10 : index
    %109 = arith.index_cast %1 : i32 to index
    %c0_27 = arith.constant 0 : index
    %110 = vector.load %arg1[%c10, %109, %c0_27] : memref<32x8x128xf32, #tpu.memory_space<vmem>>, vector<1x8x128xf32>
    %111 = vector.shape_cast %110 : vector<1x8x128xf32> to vector<8x128xf32>
    %c18 = arith.constant 18 : index
    %112 = arith.index_cast %1 : i32 to index
    %c0_28 = arith.constant 0 : index
    %113 = vector.load %arg1[%c18, %112, %c0_28] : memref<32x8x128xf32, #tpu.memory_space<vmem>>, vector<1x8x128xf32>
    %114 = vector.shape_cast %113 : vector<1x8x128xf32> to vector<8x128xf32>
    %c26 = arith.constant 26 : index
    %115 = arith.index_cast %1 : i32 to index
    %c0_29 = arith.constant 0 : index
    %116 = vector.load %arg1[%c26, %115, %c0_29] : memref<32x8x128xf32, #tpu.memory_space<vmem>>, vector<1x8x128xf32>
    %117 = vector.shape_cast %116 : vector<1x8x128xf32> to vector<8x128xf32>
    %118 = arith.mulf %24, %31 : vector<8x128xf32>
    %119 = arith.mulf %118, %108 : vector<8x128xf32>
    %120 = arith.addf %89, %119 : vector<8x128xf32>
    %121 = arith.mulf %118, %111 : vector<8x128xf32>
    %122 = arith.addf %91, %121 : vector<8x128xf32>
    %123 = arith.mulf %118, %114 : vector<8x128xf32>
    %124 = arith.addf %93, %123 : vector<8x128xf32>
    %125 = arith.mulf %118, %117 : vector<8x128xf32>
    %126 = arith.addf %95, %125 : vector<8x128xf32>
    %cst_30 = arith.constant 0.000000e+00 : f32
    %127 = vector.broadcast %cst_30 : f32 to vector<8x128xf32>
    %128 = arith.subf %127, %31 : vector<8x128xf32>
    %129 = arith.mulf %128, %108 : vector<8x128xf32>
    %130 = arith.addf %99, %129 : vector<8x128xf32>
    %131 = arith.mulf %33, %108 : vector<8x128xf32>
    %132 = arith.addf %103, %131 : vector<8x128xf32>
    %cst_31 = arith.constant 0.000000e+00 : f32
    %133 = vector.broadcast %cst_31 : f32 to vector<8x128xf32>
    %134 = arith.subf %133, %38 : vector<8x128xf32>
    %135 = arith.mulf %134, %108 : vector<8x128xf32>
    %136 = arith.addf %105, %135 : vector<8x128xf32>
    %c3_32 = arith.constant 3 : index
    %137 = arith.index_cast %1 : i32 to index
    %c0_33 = arith.constant 0 : index
    %138 = vector.load %arg1[%c3_32, %137, %c0_33] : memref<32x8x128xf32, #tpu.memory_space<vmem>>, vector<1x8x128xf32>
    %139 = vector.shape_cast %138 : vector<1x8x128xf32> to vector<8x128xf32>
    %c11 = arith.constant 11 : index
    %140 = arith.index_cast %1 : i32 to index
    %c0_34 = arith.constant 0 : index
    %141 = vector.load %arg1[%c11, %140, %c0_34] : memref<32x8x128xf32, #tpu.memory_space<vmem>>, vector<1x8x128xf32>
    %142 = vector.shape_cast %141 : vector<1x8x128xf32> to vector<8x128xf32>
    %c19 = arith.constant 19 : index
    %143 = arith.index_cast %1 : i32 to index
    %c0_35 = arith.constant 0 : index
    %144 = vector.load %arg1[%c19, %143, %c0_35] : memref<32x8x128xf32, #tpu.memory_space<vmem>>, vector<1x8x128xf32>
    %145 = vector.shape_cast %144 : vector<1x8x128xf32> to vector<8x128xf32>
    %c27 = arith.constant 27 : index
    %146 = arith.index_cast %1 : i32 to index
    %c0_36 = arith.constant 0 : index
    %147 = vector.load %arg1[%c27, %146, %c0_36] : memref<32x8x128xf32, #tpu.memory_space<vmem>>, vector<1x8x128xf32>
    %148 = vector.shape_cast %147 : vector<1x8x128xf32> to vector<8x128xf32>
    %149 = arith.mulf %24, %32 : vector<8x128xf32>
    %150 = arith.mulf %149, %139 : vector<8x128xf32>
    %151 = arith.addf %120, %150 : vector<8x128xf32>
    %152 = arith.mulf %149, %142 : vector<8x128xf32>
    %153 = arith.addf %122, %152 : vector<8x128xf32>
    %154 = arith.mulf %149, %145 : vector<8x128xf32>
    %155 = arith.addf %124, %154 : vector<8x128xf32>
    %156 = arith.mulf %149, %148 : vector<8x128xf32>
    %157 = arith.addf %126, %156 : vector<8x128xf32>
    %cst_37 = arith.constant 0.000000e+00 : f32
    %158 = vector.broadcast %cst_37 : f32 to vector<8x128xf32>
    %159 = arith.subf %158, %32 : vector<8x128xf32>
    %160 = arith.mulf %159, %139 : vector<8x128xf32>
    %161 = arith.addf %130, %160 : vector<8x128xf32>
    %162 = arith.mulf %34, %139 : vector<8x128xf32>
    %163 = arith.addf %132, %162 : vector<8x128xf32>
    %164 = arith.mulf %38, %139 : vector<8x128xf32>
    %165 = arith.addf %136, %164 : vector<8x128xf32>
    %c4_38 = arith.constant 4 : index
    %166 = arith.index_cast %1 : i32 to index
    %c0_39 = arith.constant 0 : index
    %167 = vector.load %arg1[%c4_38, %166, %c0_39] : memref<32x8x128xf32, #tpu.memory_space<vmem>>, vector<1x8x128xf32>
    %168 = vector.shape_cast %167 : vector<1x8x128xf32> to vector<8x128xf32>
    %c12 = arith.constant 12 : index
    %169 = arith.index_cast %1 : i32 to index
    %c0_40 = arith.constant 0 : index
    %170 = vector.load %arg1[%c12, %169, %c0_40] : memref<32x8x128xf32, #tpu.memory_space<vmem>>, vector<1x8x128xf32>
    %171 = vector.shape_cast %170 : vector<1x8x128xf32> to vector<8x128xf32>
    %c20 = arith.constant 20 : index
    %172 = arith.index_cast %1 : i32 to index
    %c0_41 = arith.constant 0 : index
    %173 = vector.load %arg1[%c20, %172, %c0_41] : memref<32x8x128xf32, #tpu.memory_space<vmem>>, vector<1x8x128xf32>
    %174 = vector.shape_cast %173 : vector<1x8x128xf32> to vector<8x128xf32>
    %c28 = arith.constant 28 : index
    %175 = arith.index_cast %1 : i32 to index
    %c0_42 = arith.constant 0 : index
    %176 = vector.load %arg1[%c28, %175, %c0_42] : memref<32x8x128xf32, #tpu.memory_space<vmem>>, vector<1x8x128xf32>
    %177 = vector.shape_cast %176 : vector<1x8x128xf32> to vector<8x128xf32>
    %178 = arith.mulf %4, %29 : vector<8x128xf32>
    %179 = arith.mulf %178, %168 : vector<8x128xf32>
    %180 = arith.addf %151, %179 : vector<8x128xf32>
    %181 = arith.mulf %178, %171 : vector<8x128xf32>
    %182 = arith.addf %153, %181 : vector<8x128xf32>
    %183 = arith.mulf %178, %174 : vector<8x128xf32>
    %184 = arith.addf %155, %183 : vector<8x128xf32>
    %185 = arith.mulf %178, %177 : vector<8x128xf32>
    %186 = arith.addf %157, %185 : vector<8x128xf32>
    %187 = arith.mulf %29, %168 : vector<8x128xf32>
    %188 = arith.addf %161, %187 : vector<8x128xf32>
    %cst_43 = arith.constant 0.000000e+00 : f32
    %189 = vector.broadcast %cst_43 : f32 to vector<8x128xf32>
    %190 = arith.subf %189, %35 : vector<8x128xf32>
    %191 = arith.mulf %190, %168 : vector<8x128xf32>
    %192 = arith.addf %163, %191 : vector<8x128xf32>
    %cst_44 = arith.constant 0.000000e+00 : f32
    %193 = vector.broadcast %cst_44 : f32 to vector<8x128xf32>
    %194 = arith.subf %193, %39 : vector<8x128xf32>
    %195 = arith.mulf %194, %168 : vector<8x128xf32>
    %196 = arith.addf %165, %195 : vector<8x128xf32>
    %c5_45 = arith.constant 5 : index
    %197 = arith.index_cast %1 : i32 to index
    %c0_46 = arith.constant 0 : index
    %198 = vector.load %arg1[%c5_45, %197, %c0_46] : memref<32x8x128xf32, #tpu.memory_space<vmem>>, vector<1x8x128xf32>
    %199 = vector.shape_cast %198 : vector<1x8x128xf32> to vector<8x128xf32>
    %c13 = arith.constant 13 : index
    %200 = arith.index_cast %1 : i32 to index
    %c0_47 = arith.constant 0 : index
    %201 = vector.load %arg1[%c13, %200, %c0_47] : memref<32x8x128xf32, #tpu.memory_space<vmem>>, vector<1x8x128xf32>
    %202 = vector.shape_cast %201 : vector<1x8x128xf32> to vector<8x128xf32>
    %c21 = arith.constant 21 : index
    %203 = arith.index_cast %1 : i32 to index
    %c0_48 = arith.constant 0 : index
    %204 = vector.load %arg1[%c21, %203, %c0_48] : memref<32x8x128xf32, #tpu.memory_space<vmem>>, vector<1x8x128xf32>
    %205 = vector.shape_cast %204 : vector<1x8x128xf32> to vector<8x128xf32>
    %c29 = arith.constant 29 : index
    %206 = arith.index_cast %1 : i32 to index
    %c0_49 = arith.constant 0 : index
    %207 = vector.load %arg1[%c29, %206, %c0_49] : memref<32x8x128xf32, #tpu.memory_space<vmem>>, vector<1x8x128xf32>
    %208 = vector.shape_cast %207 : vector<1x8x128xf32> to vector<8x128xf32>
    %209 = arith.mulf %4, %30 : vector<8x128xf32>
    %210 = arith.mulf %209, %199 : vector<8x128xf32>
    %211 = arith.addf %180, %210 : vector<8x128xf32>
    %212 = arith.mulf %209, %202 : vector<8x128xf32>
    %213 = arith.addf %182, %212 : vector<8x128xf32>
    %214 = arith.mulf %209, %205 : vector<8x128xf32>
    %215 = arith.addf %184, %214 : vector<8x128xf32>
    %216 = arith.mulf %209, %208 : vector<8x128xf32>
    %217 = arith.addf %186, %216 : vector<8x128xf32>
    %218 = arith.mulf %30, %199 : vector<8x128xf32>
    %219 = arith.addf %188, %218 : vector<8x128xf32>
    %cst_50 = arith.constant 0.000000e+00 : f32
    %220 = vector.broadcast %cst_50 : f32 to vector<8x128xf32>
    %221 = arith.subf %220, %36 : vector<8x128xf32>
    %222 = arith.mulf %221, %199 : vector<8x128xf32>
    %223 = arith.addf %192, %222 : vector<8x128xf32>
    %224 = arith.mulf %39, %199 : vector<8x128xf32>
    %225 = arith.addf %196, %224 : vector<8x128xf32>
    %c6_51 = arith.constant 6 : index
    %226 = arith.index_cast %1 : i32 to index
    %c0_52 = arith.constant 0 : index
    %227 = vector.load %arg1[%c6_51, %226, %c0_52] : memref<32x8x128xf32, #tpu.memory_space<vmem>>, vector<1x8x128xf32>
    %228 = vector.shape_cast %227 : vector<1x8x128xf32> to vector<8x128xf32>
    %c14 = arith.constant 14 : index
    %229 = arith.index_cast %1 : i32 to index
    %c0_53 = arith.constant 0 : index
    %230 = vector.load %arg1[%c14, %229, %c0_53] : memref<32x8x128xf32, #tpu.memory_space<vmem>>, vector<1x8x128xf32>
    %231 = vector.shape_cast %230 : vector<1x8x128xf32> to vector<8x128xf32>
    %c22 = arith.constant 22 : index
    %232 = arith.index_cast %1 : i32 to index
    %c0_54 = arith.constant 0 : index
    %233 = vector.load %arg1[%c22, %232, %c0_54] : memref<32x8x128xf32, #tpu.memory_space<vmem>>, vector<1x8x128xf32>
    %234 = vector.shape_cast %233 : vector<1x8x128xf32> to vector<8x128xf32>
    %c30 = arith.constant 30 : index
    %235 = arith.index_cast %1 : i32 to index
    %c0_55 = arith.constant 0 : index
    %236 = vector.load %arg1[%c30, %235, %c0_55] : memref<32x8x128xf32, #tpu.memory_space<vmem>>, vector<1x8x128xf32>
    %237 = vector.shape_cast %236 : vector<1x8x128xf32> to vector<8x128xf32>
    %238 = arith.mulf %4, %31 : vector<8x128xf32>
    %239 = arith.mulf %238, %228 : vector<8x128xf32>
    %240 = arith.addf %211, %239 : vector<8x128xf32>
    %241 = arith.mulf %238, %231 : vector<8x128xf32>
    %242 = arith.addf %213, %241 : vector<8x128xf32>
    %243 = arith.mulf %238, %234 : vector<8x128xf32>
    %244 = arith.addf %215, %243 : vector<8x128xf32>
    %245 = arith.mulf %238, %237 : vector<8x128xf32>
    %246 = arith.addf %217, %245 : vector<8x128xf32>
    %247 = arith.mulf %31, %228 : vector<8x128xf32>
    %248 = arith.addf %219, %247 : vector<8x128xf32>
    %249 = arith.mulf %35, %228 : vector<8x128xf32>
    %250 = arith.addf %223, %249 : vector<8x128xf32>
    %cst_56 = arith.constant 0.000000e+00 : f32
    %251 = vector.broadcast %cst_56 : f32 to vector<8x128xf32>
    %252 = arith.subf %251, %40 : vector<8x128xf32>
    %253 = arith.mulf %252, %228 : vector<8x128xf32>
    %254 = arith.addf %225, %253 : vector<8x128xf32>
    %c7 = arith.constant 7 : index
    %255 = arith.index_cast %1 : i32 to index
    %c0_57 = arith.constant 0 : index
    %256 = vector.load %arg1[%c7, %255, %c0_57] : memref<32x8x128xf32, #tpu.memory_space<vmem>>, vector<1x8x128xf32>
    %257 = vector.shape_cast %256 : vector<1x8x128xf32> to vector<8x128xf32>
    %c15 = arith.constant 15 : index
    %258 = arith.index_cast %1 : i32 to index
    %c0_58 = arith.constant 0 : index
    %259 = vector.load %arg1[%c15, %258, %c0_58] : memref<32x8x128xf32, #tpu.memory_space<vmem>>, vector<1x8x128xf32>
    %260 = vector.shape_cast %259 : vector<1x8x128xf32> to vector<8x128xf32>
    %c23 = arith.constant 23 : index
    %261 = arith.index_cast %1 : i32 to index
    %c0_59 = arith.constant 0 : index
    %262 = vector.load %arg1[%c23, %261, %c0_59] : memref<32x8x128xf32, #tpu.memory_space<vmem>>, vector<1x8x128xf32>
    %263 = vector.shape_cast %262 : vector<1x8x128xf32> to vector<8x128xf32>
    %c31 = arith.constant 31 : index
    %264 = arith.index_cast %1 : i32 to index
    %c0_60 = arith.constant 0 : index
    %265 = vector.load %arg1[%c31, %264, %c0_60] : memref<32x8x128xf32, #tpu.memory_space<vmem>>, vector<1x8x128xf32>
    %266 = vector.shape_cast %265 : vector<1x8x128xf32> to vector<8x128xf32>
    %267 = arith.mulf %4, %32 : vector<8x128xf32>
    %268 = arith.mulf %267, %257 : vector<8x128xf32>
    %269 = arith.addf %240, %268 : vector<8x128xf32>
    %270 = arith.mulf %267, %260 : vector<8x128xf32>
    %271 = arith.addf %242, %270 : vector<8x128xf32>
    %272 = arith.mulf %267, %263 : vector<8x128xf32>
    %273 = arith.addf %244, %272 : vector<8x128xf32>
    %274 = arith.mulf %267, %266 : vector<8x128xf32>
    %275 = arith.addf %246, %274 : vector<8x128xf32>
    %276 = arith.mulf %32, %257 : vector<8x128xf32>
    %277 = arith.addf %248, %276 : vector<8x128xf32>
    %278 = arith.mulf %36, %257 : vector<8x128xf32>
    %279 = arith.addf %250, %278 : vector<8x128xf32>
    %280 = arith.mulf %40, %257 : vector<8x128xf32>
    %281 = arith.addf %254, %280 : vector<8x128xf32>
    %cst_61 = arith.constant 3.750000e+00 : f32
    %282 = vector.broadcast %cst_61 : f32 to vector<8x128xf32>
    %283 = arith.mulf %277, %282 : vector<8x128xf32>
    %cst_62 = arith.constant 3.750000e+00 : f32
    %284 = vector.broadcast %cst_62 : f32 to vector<8x128xf32>
    %285 = arith.mulf %279, %284 : vector<8x128xf32>
    %cst_63 = arith.constant 3.500000e+00 : f32
    %286 = vector.broadcast %cst_63 : f32 to vector<8x128xf32>
    %287 = arith.mulf %281, %286 : vector<8x128xf32>
    %288 = math.absf %269 : vector<8x128xf32>
    %cst_64 = arith.constant 0.000000e+00 : f32
    %289 = vector.broadcast %cst_64 : f32 to vector<8x128xf32>
    %290 = arith.subf %289, %288 : vector<8x128xf32>
    %cst_65 = arith.constant 9.990010e+00 : f32
    %291 = vector.broadcast %cst_65 : f32 to vector<8x128xf32>
    %292 = arith.mulf %290, %291 : vector<8x128xf32>
    %293 = math.exp %292 : vector<8x128xf32>
    %cst_66 = arith.constant 0.000000e+00 : f32
    %294 = vector.broadcast %cst_66 : f32 to vector<8x128xf32>
    %295 = arith.cmpf oge, %269, %294 : vector<8x128xf32>
    %cst_67 = arith.constant 5.000000e-01 : f32
    %296 = vector.broadcast %cst_67 : f32 to vector<8x128xf32>
    %297 = arith.mulf %296, %293 : vector<8x128xf32>
    %cst_68 = arith.constant 5.000000e-01 : f32
    %298 = vector.broadcast %cst_68 : f32 to vector<8x128xf32>
    %299 = arith.mulf %298, %293 : vector<8x128xf32>
    %cst_69 = arith.constant 1.000000e+00 : f32
    %300 = vector.broadcast %cst_69 : f32 to vector<8x128xf32>
    %301 = arith.subf %300, %299 : vector<8x128xf32>
    %302 = arith.select %295, %297, %301 : vector<8x128xi1>, vector<8x128xf32>
    %cst_70 = arith.constant 9.990010e+00 : f32
    %303 = vector.broadcast %cst_70 : f32 to vector<8x128xf32>
    %304 = arith.mulf %303, %302 : vector<8x128xf32>
    %305 = arith.mulf %13, %283 : vector<8x128xf32>
    %306 = arith.mulf %16, %285 : vector<8x128xf32>
    %307 = arith.addf %305, %306 : vector<8x128xf32>
    %308 = arith.mulf %19, %287 : vector<8x128xf32>
    %309 = arith.addf %307, %308 : vector<8x128xf32>
    %cst_71 = arith.constant 0.000000e+00 : f32
    %310 = vector.broadcast %cst_71 : f32 to vector<8x128xf32>
    %311 = arith.subf %310, %309 : vector<8x128xf32>
    %cst_72 = arith.constant 5.000000e-01 : f32
    %312 = vector.broadcast %cst_72 : f32 to vector<8x128xf32>
    %313 = arith.mulf %311, %312 : vector<8x128xf32>
    %cst_73 = arith.constant 5.000000e-01 : f32
    %314 = vector.broadcast %cst_73 : f32 to vector<8x128xf32>
    %315 = arith.addf %313, %314 : vector<8x128xf32>
    %cst_74 = arith.constant 0.000000e+00 : f32
    %316 = vector.broadcast %cst_74 : f32 to vector<8x128xf32>
    %317 = arith.maximumf %315, %316 : vector<8x128xf32>
    %cst_75 = arith.constant 0.000000e+00 : f32
    %318 = vector.broadcast %cst_75 : f32 to vector<8x128xf32>
    %319 = arith.mulf %317, %318 : vector<8x128xf32>
    %cst_76 = arith.constant 0.000000e+00 : f32
    %320 = vector.broadcast %cst_76 : f32 to vector<8x128xf32>
    %321 = arith.subf %320, %309 : vector<8x128xf32>
    %cst_77 = arith.constant 0.000000e+00 : f32
    %322 = vector.broadcast %cst_77 : f32 to vector<8x128xf32>
    %323 = arith.maximumf %321, %322 : vector<8x128xf32>
    %cst_78 = arith.constant 1.000000e+00 : f32
    %324 = vector.broadcast %cst_78 : f32 to vector<8x128xf32>
    %325 = arith.mulf %323, %324 : vector<8x128xf32>
    %326 = arith.addf %319, %325 : vector<8x128xf32>
    %cst_79 = arith.constant 0.000000e+00 : f32
    %327 = vector.broadcast %cst_79 : f32 to vector<8x128xf32>
    %328 = arith.subf %327, %326 : vector<8x128xf32>
    %329 = arith.mulf %328, %22 : vector<8x128xf32>
    %cst_80 = arith.constant 5.000000e-01 : f32
    %330 = vector.broadcast %cst_80 : f32 to vector<8x128xf32>
    %331 = arith.mulf %329, %330 : vector<8x128xf32>
    %332 = arith.addf %269, %331 : vector<8x128xf32>
    %333 = arith.subf %269, %331 : vector<8x128xf32>
    %cst_81 = arith.constant 1.35914087 : f32
    %334 = vector.broadcast %cst_81 : f32 to vector<8x128xf32>
    %335 = arith.mulf %333, %334 : vector<8x128xf32>
    %336 = math.tanh %335 : vector<8x128xf32>
    %cst_82 = arith.constant 5.000000e-01 : f32
    %337 = vector.broadcast %cst_82 : f32 to vector<8x128xf32>
    %338 = arith.mulf %337, %336 : vector<8x128xf32>
    %cst_83 = arith.constant 5.000000e-01 : f32
    %339 = vector.broadcast %cst_83 : f32 to vector<8x128xf32>
    %340 = arith.addf %338, %339 : vector<8x128xf32>
    %cst_84 = arith.constant 1.35914087 : f32
    %341 = vector.broadcast %cst_84 : f32 to vector<8x128xf32>
    %342 = arith.mulf %332, %341 : vector<8x128xf32>
    %343 = math.tanh %342 : vector<8x128xf32>
    %cst_85 = arith.constant 5.000000e-01 : f32
    %344 = vector.broadcast %cst_85 : f32 to vector<8x128xf32>
    %345 = arith.mulf %344, %343 : vector<8x128xf32>
    %cst_86 = arith.constant 5.000000e-01 : f32
    %346 = vector.broadcast %cst_86 : f32 to vector<8x128xf32>
    %347 = arith.addf %345, %346 : vector<8x128xf32>
    %348 = arith.subf %340, %347 : vector<8x128xf32>
    %cst_87 = arith.constant 9.99999974E-6 : f32
    %349 = vector.broadcast %cst_87 : f32 to vector<8x128xf32>
    %350 = arith.addf %348, %349 : vector<8x128xf32>
    %cst_88 = arith.constant 9.99999974E-6 : f32
    %351 = vector.broadcast %cst_88 : f32 to vector<8x128xf32>
    %352 = arith.addf %340, %351 : vector<8x128xf32>
    %353 = tpu.reciprocal %352 {approx = true} : vector<8x128xf32> -> vector<8x128xf32>
    %354 = arith.mulf %350, %353 : vector<8x128xf32>
    %cst_89 = arith.constant 0.000000e+00 : f32
    %cst_90 = arith.constant 1.000000e+00 : f32
    %355 = vector.broadcast %cst_89 : f32 to vector<8x128xf32>
    %356 = arith.maximumf %355, %354 : vector<8x128xf32>
    %357 = vector.broadcast %cst_90 : f32 to vector<8x128xf32>
    %358 = arith.minimumf %357, %356 : vector<8x128xf32>
    %c0_91 = arith.constant 0 : index
    %359 = arith.index_cast %1 : i32 to index
    %c0_92 = arith.constant 0 : index
    %360 = vector.load %arg3[%c0_91, %359, %c0_92] : memref<9x8x128xf32, #tpu.memory_space<vmem>>, vector<1x8x128xf32>
    %361 = vector.shape_cast %360 : vector<1x8x128xf32> to vector<8x128xf32>
    %362 = vector.shape_cast %269 : vector<8x128xf32> to vector<1x8x128xf32>
    tpu.vector_store %arg3[%c0_91, %359, %c0_92], %362 {strides = array<i32>} : memref<9x8x128xf32, #tpu.memory_space<vmem>>, vector<1x8x128xf32>,
    %c1_93 = arith.constant 1 : index
    %363 = arith.index_cast %1 : i32 to index
    %c0_94 = arith.constant 0 : index
    %364 = vector.load %arg3[%c1_93, %363, %c0_94] : memref<9x8x128xf32, #tpu.memory_space<vmem>>, vector<1x8x128xf32>
    %365 = vector.shape_cast %364 : vector<1x8x128xf32> to vector<8x128xf32>
    %366 = vector.shape_cast %271 : vector<8x128xf32> to vector<1x8x128xf32>
    tpu.vector_store %arg3[%c1_93, %363, %c0_94], %366 {strides = array<i32>} : memref<9x8x128xf32, #tpu.memory_space<vmem>>, vector<1x8x128xf32>,
    %c2_95 = arith.constant 2 : index
    %367 = arith.index_cast %1 : i32 to index
    %c0_96 = arith.constant 0 : index
    %368 = vector.load %arg3[%c2_95, %367, %c0_96] : memref<9x8x128xf32, #tpu.memory_space<vmem>>, vector<1x8x128xf32>
    %369 = vector.shape_cast %368 : vector<1x8x128xf32> to vector<8x128xf32>
    %370 = vector.shape_cast %273 : vector<8x128xf32> to vector<1x8x128xf32>
    tpu.vector_store %arg3[%c2_95, %367, %c0_96], %370 {strides = array<i32>} : memref<9x8x128xf32, #tpu.memory_space<vmem>>, vector<1x8x128xf32>,
    %c3_97 = arith.constant 3 : index
    %371 = arith.index_cast %1 : i32 to index
    %c0_98 = arith.constant 0 : index
    %372 = vector.load %arg3[%c3_97, %371, %c0_98] : memref<9x8x128xf32, #tpu.memory_space<vmem>>, vector<1x8x128xf32>
    %373 = vector.shape_cast %372 : vector<1x8x128xf32> to vector<8x128xf32>
    %374 = vector.shape_cast %275 : vector<8x128xf32> to vector<1x8x128xf32>
    tpu.vector_store %arg3[%c3_97, %371, %c0_98], %374 {strides = array<i32>} : memref<9x8x128xf32, #tpu.memory_space<vmem>>, vector<1x8x128xf32>,
    %c4_99 = arith.constant 4 : index
    %375 = arith.index_cast %1 : i32 to index
    %c0_100 = arith.constant 0 : index
    %376 = vector.load %arg3[%c4_99, %375, %c0_100] : memref<9x8x128xf32, #tpu.memory_space<vmem>>, vector<1x8x128xf32>
    %377 = vector.shape_cast %376 : vector<1x8x128xf32> to vector<8x128xf32>
    %378 = vector.shape_cast %304 : vector<8x128xf32> to vector<1x8x128xf32>
    tpu.vector_store %arg3[%c4_99, %375, %c0_100], %378 {strides = array<i32>} : memref<9x8x128xf32, #tpu.memory_space<vmem>>, vector<1x8x128xf32>,
    %c5_101 = arith.constant 5 : index
    %379 = arith.index_cast %1 : i32 to index
    %c0_102 = arith.constant 0 : index
    %380 = vector.load %arg3[%c5_101, %379, %c0_102] : memref<9x8x128xf32, #tpu.memory_space<vmem>>, vector<1x8x128xf32>
    %381 = vector.shape_cast %380 : vector<1x8x128xf32> to vector<8x128xf32>
    %382 = vector.shape_cast %283 : vector<8x128xf32> to vector<1x8x128xf32>
    tpu.vector_store %arg3[%c5_101, %379, %c0_102], %382 {strides = array<i32>} : memref<9x8x128xf32, #tpu.memory_space<vmem>>, vector<1x8x128xf32>,
    %c6_103 = arith.constant 6 : index
    %383 = arith.index_cast %1 : i32 to index
    %c0_104 = arith.constant 0 : index
    %384 = vector.load %arg3[%c6_103, %383, %c0_104] : memref<9x8x128xf32, #tpu.memory_space<vmem>>, vector<1x8x128xf32>
    %385 = vector.shape_cast %384 : vector<1x8x128xf32> to vector<8x128xf32>
    %386 = vector.shape_cast %285 : vector<8x128xf32> to vector<1x8x128xf32>
    tpu.vector_store %arg3[%c6_103, %383, %c0_104], %386 {strides = array<i32>} : memref<9x8x128xf32, #tpu.memory_space<vmem>>, vector<1x8x128xf32>,
    %c7_105 = arith.constant 7 : index
    %387 = arith.index_cast %1 : i32 to index
    %c0_106 = arith.constant 0 : index
    %388 = vector.load %arg3[%c7_105, %387, %c0_106] : memref<9x8x128xf32, #tpu.memory_space<vmem>>, vector<1x8x128xf32>
    %389 = vector.shape_cast %388 : vector<1x8x128xf32> to vector<8x128xf32>
    %390 = vector.shape_cast %287 : vector<8x128xf32> to vector<1x8x128xf32>
    tpu.vector_store %arg3[%c7_105, %387, %c0_106], %390 {strides = array<i32>} : memref<9x8x128xf32, #tpu.memory_space<vmem>>, vector<1x8x128xf32>,
    %c8_107 = arith.constant 8 : index
    %391 = arith.index_cast %1 : i32 to index
    %c0_108 = arith.constant 0 : index
    %392 = vector.load %arg3[%c8_107, %391, %c0_108] : memref<9x8x128xf32, #tpu.memory_space<vmem>>, vector<1x8x128xf32>
    %393 = vector.shape_cast %392 : vector<1x8x128xf32> to vector<8x128xf32>
    %394 = vector.shape_cast %358 : vector<8x128xf32> to vector<1x8x128xf32>
    tpu.vector_store %arg3[%c8_107, %391, %c0_108], %394 {strides = array<i32>} : memref<9x8x128xf32, #tpu.memory_space<vmem>>, vector<1x8x128xf32>,
    %c1_i32 = arith.constant 1 : i32
    return
  }
  func.func @transform_0(%arg0: i32) -> (i32, i32, i32) {
    %c0_i32 = arith.constant 0 : i32
    %c0_i32_0 = arith.constant 0 : i32
    %c0_i32_1 = arith.constant 0 : i32
    return %c0_i32, %arg0, %c0_i32_0 : i32, i32, i32
  }
  func.func @transform_1(%arg0: i32) -> (i32, i32, i32) {
    %c0_i32 = arith.constant 0 : i32
    %c0_i32_0 = arith.constant 0 : i32
    %c0_i32_1 = arith.constant 0 : i32
    return %c0_i32, %arg0, %c0_i32_0 : i32, i32, i32
  }
  func.func @transform_2(%arg0: i32) -> (i32, i32, i32) {
    %c0_i32 = arith.constant 0 : i32
    %c0_i32_0 = arith.constant 0 : i32
    %c0_i32_1 = arith.constant 0 : i32
    return %c0_i32, %arg0, %c0_i32_0 : i32, i32, i32
  }
}

</mosaic_0001>

<bundles_post_ra>
// kernel: squeeze.15
= control target key start
LH: loop header
LB: loop body
LE: loop exit
PB: predicated region body
PF: predicated region fallthrough
CT: control target
= control target key end

     0   :  { %vm6_vm0 = vcmask 261120   ;;  %s17_s6 = smov 3  ;;  %s20_s7 = smov 3  ;;  %vm41_vm1 = vcmask 785408   ;;  %vm52_vm2 = vcmask 523264   ;;  %s328_s0 = inlined_call_operand.vmem [shape: f32[1280], index: 0, kind: input, shape index: {}]   ;;  %s329_s1 = inlined_call_operand.hbm [shape: f32[8,160,1], index: 1, kind: output, shape index: {}]  }
   0x1   :  { %v232_v0 = vld [vmem:[%s328_s0 + $0x2] ss:$5 sm:%s17_s6]   ;;  %s4_s12 = smov 3  ;;  %v238_v4 = vld.sshfl [vmem:[%s328_s0 + $0x3] sm:$0xff pattern:$0x66666510]  }
   0x2   :  { %v233_v1 = vld [vmem:[%s328_s0 + $0x2] ss:$5 sm:%s20_s7]   ;;  %v231_v3 = vld [vmem:[%s328_s0 + $0x1] ss:$5 sm:%s4_s12]   ;;  %s79_s17 = smov 3  ;;  %s266_s18 = smov 96  }
   0x3   :  { %v23_v2 = vsel %vm6_vm0, %v233_v1, %v232_v0  ;;  %8 = vst.msk [vmem:[#allocation2 + $0x8] sm:$0x1] %vm6_vm0, %v231_v3   ;;  %10 = vst.msk [vmem:[#allocation2 + $0x47] sm:$0x2] %vm6_vm0, %v231_v3   ;;  %v239_v5 = vld [vmem:[%s328_s0 + $0x4] ss:$5 sm:%s79_s17]  }
   0x4   :  { %24 = vrot.lane.b32.xlu0 %v23_v2, %s266_s18  ;;  %s47_s21 = smov 3  ;;  %v82_v6 = vsel %vm41_vm1, %v239_v5, %v238_v4  ;;  %s50_s24 = smov 3 }
   0x5   :  { %v235_v7 = vld [vmem:[%s328_s0 + $0x3] ss:$5 sm:%s47_s21]  }
   0x6   :  { %2 = vsyncpa [#allocation1], 0  ;;  %s267_s25 = smov 32   ;;  %v236_v8 = vld [vmem:[%s328_s0 + $0x3] ss:$5 sm:%s50_s24]   ;;  %s37_s28 = smov 3 }
   0x7   :  { %83 = vrot.lane.b32.xlu1 %v82_v6, %s267_s25  ;;  %s67_s29 = smov 3  ;;  %v53_v9 = vsel %vm52_vm2, %v236_v8, %v235_v7  ;;  %v234_v10 = vld [vmem:[%s328_s0 + $0x1] ss:$5 sm:%s37_s28]   ;;  %s11_s3 = smov 3  ;;  %vm31_vm3 = vcmask 1048320   ;;  %vm90_vm4 = vcmask 1047808  }
   0x8   :  { %s268_s4 = smov 64   ;;  %v12_v11 = vld [vmem:[%s328_s0] ss:$5 sm:%s11_s3]   ;;  %vm61_vm5 = vcmask 1048064  }
   0x9   :  { %54 = vrot.lane.b32.xlu0 %v53_v9, %s268_s4  ;;  %v237_v12 = vld [vmem:[%s328_s0 + $0x2] ss:$5 sm:%s67_s29]   ;;  %13 = vst [vmem:[#allocation2] sm:$0x1] %v12_v11   ;;  %15 = vst [vmem:[#allocation2 + $0x3f] sm:$0x2] %v12_v11  }
   0xa   :  { %v104_v13 = vld [vmem:[#allocation2 + $0x8] sm:$0x1]  ;;  %s269_s0 = smov [#allocation0]  }
   0xb   :  { %39 = vrot.lane.b32.xlu1 %v234_v10, %s266_s18  ;;  %v159_v14 = vld [vmem:[#allocation2 + $0x48] sm:$0x1]  ;;  %108 = vst [vmem:[#allocation0 + $0x1] sm:$0x1] %v104_v13  ;;  %s211_s9 = sshll.u32 %s269_s0, 4  ;;  %s212_s9 = int_to_ptr.vmem [resolvable:$true] %s211_s9 }
   0xc   :  { %164 = vst [vmem:[#allocation0 + $0x9] sm:$0x1] %v159_v14  ;;  %s244_s10 = scalar_lea.vmem %s212_s9, 256  ;;  %p249_p1 = scmp.lt.s32.totalorder %s212_s9, %s212_s9 }
   0xd   :  { %69 = vrot.lane.b32.xlu0 %v237_v12, %s268_s4  ;;  %p245_p0 = scmp.ne.s32.totalorder %s212_s9, %s244_s10  ;;  %p250_p2 = scmp.lt.s32.totalorder %s244_s10, %s244_s10 }
   0xf   :  { %p251_p3 = por %p250_p2, %p249_p1 }
  0x10   :  { %v99_v15 = vld [vmem:[#allocation2] sm:$0x1] }
  0x11   :  { %v152_v16 = vld [vmem:[#allocation2 + $0x40] sm:$0x1]  ;;  %102 = vst [vmem:[#allocation0] sm:$0x1] %v99_v15  ;;  %p252_p4 = pnand %p251_p3, %p245_p0 }
  0x12   :  { %157 = vst [vmem:[#allocation0 + $0x8] sm:$0x1] %v152_v16 }
  0x76   :  { %v25_v17 = vpop.permute.xlu0 %24  }
  0x77   :  { %28 = vst.msk [vmem:[#allocation2 + $0x18] sm:$0x1] %vm6_vm0, %v25_v17   ;;  %30 = vst.msk [vmem:[#allocation2 + $0x57] sm:$0x2] %vm6_vm0, %v25_v17  }
  0x78   :  { %33 = vst.msk [vmem:[#allocation2 + $0x10] sm:$0x1] %vm31_vm3, %v25_v17   ;;  %35 = vst.msk [vmem:[#allocation2 + $0x4f] sm:$0x2] %vm31_vm3, %v25_v17  }
  0x79   :  { %v84_v18 = vpop.permute.xlu1 %83  }
  0x7a   :  { %87 = vst.msk [vmem:[#allocation2 + $0x30] ss:$8 sm:$0x3] %vm6_vm0, %v84_v18   ;;  %89 = vst.msk [vmem:[#allocation2 + $0x60] ss:$8 sm:$0xc] %vm6_vm0, %v84_v18  }
  0x7b   :  { %92 = vst.msk [vmem:[#allocation2 + $0x30] sm:$0x1] %vm90_vm4, %v84_v18   ;;  %94 = vst.msk [vmem:[#allocation2 + $0x6f] sm:$0x2] %vm90_vm4, %v84_v18   ;;  %v55_v19 = vpop.permute.xlu0 %54  }
  0x7c   :  { %58 = vst.msk [vmem:[#allocation2 + $0x28] sm:$0x1] %vm6_vm0, %v55_v19   ;;  %60 = vst.msk [vmem:[#allocation2 + $0x67] sm:$0x2] %vm6_vm0, %v55_v19  }
  0x7d   :  { %63 = vst.msk [vmem:[#allocation2 + $0x20] sm:$0x1] %vm61_vm5, %v55_v19   ;;  %65 = vst.msk [vmem:[#allocation2 + $0x5f] sm:$0x2] %vm61_vm5, %v55_v19   ;;  %v40_v20 = vpop.permute.xlu1 %39  }
  0x7e   :  { %43 = vst.msk [vmem:[#allocation2 + $0x10] sm:$0x1] %vm41_vm1, %v40_v20   ;;  %45 = vst.msk [vmem:[#allocation2 + $0x4f] sm:$0x2] %vm41_vm1, %v40_v20   ;;  %v117_v21 = vld [vmem:[#allocation2 + $0x18] sm:$0x1] }
  0x7f   :  { %v173_v22 = vld [vmem:[#allocation2 + $0x58] sm:$0x1]  ;;  %v70_v23 = vpop.permute.xlu0 %69   ;;  %122 = vst [vmem:[#allocation0 + $0x3] sm:$0x1] %v117_v21 }
  0x80   :  { %178 = vst [vmem:[#allocation0 + $0xb] sm:$0x1] %v173_v22  ;;  %73 = vst.msk [vmem:[#allocation2 + $0x20] sm:$0x1] %vm52_vm2, %v70_v23  }
  0x81   :  { %75 = vst.msk [vmem:[#allocation2 + $0x5f] sm:$0x2] %vm52_vm2, %v70_v23   ;;  %v145_v24 = vld [vmem:[#allocation2 + $0x38] sm:$0x1] }
  0x82   :  { %v201_v25 = vld [vmem:[#allocation2 + $0x78] sm:$0x1]  ;;  %v138_v26 = vld [vmem:[#allocation2 + $0x30] sm:$0x1]  ;;  %150 = vst [vmem:[#allocation0 + $0x7] sm:$0x1] %v145_v24 }
  0x83   :  { %v194_v27 = vld [vmem:[#allocation2 + $0x70] sm:$0x1]  ;;  %206 = vst [vmem:[#allocation0 + $0xf] sm:$0x1] %v201_v25  ;;  %143 = vst [vmem:[#allocation0 + $0x6] sm:$0x1] %v138_v26 }
  0x84   :  { %199 = vst [vmem:[#allocation0 + $0xe] sm:$0x1] %v194_v27  ;;  %v131_v28 = vld [vmem:[#allocation2 + $0x28] sm:$0x1] }
  0x85   :  { %v187_v29 = vld [vmem:[#allocation2 + $0x68] sm:$0x1]  ;;  %136 = vst [vmem:[#allocation0 + $0x5] sm:$0x1] %v131_v28  ;;  %v110_v30 = vld [vmem:[#allocation2 + $0x10] sm:$0x1] }
  0x86   :  { %192 = vst [vmem:[#allocation0 + $0xd] sm:$0x1] %v187_v29  ;;  %v166_v31 = vld [vmem:[#allocation2 + $0x50] sm:$0x1]  ;;  %115 = vst [vmem:[#allocation0 + $0x2] sm:$0x1] %v110_v30 }
  0x87   :  { %171 = vst [vmem:[#allocation0 + $0xa] sm:$0x1] %v166_v31  ;;  %v124_v32 = vld [vmem:[#allocation2 + $0x20] sm:$0x1] }
  0x88   :  { %v180_v33 = vld [vmem:[#allocation2 + $0x60] sm:$0x1]  ;;  %129 = vst [vmem:[#allocation0 + $0x4] sm:$0x1] %v124_v32 }
  0x89   :  { %185 = vst [vmem:[#allocation0 + $0xc] sm:$0x1] %v180_v33 }
  0x8a   :  { %255 = shalt.err (!%p252_p4)
}
  0x8b   :  { %214 = dma.vmem_to_hbm [thread:$0]  %s212_s9, 256, %s329_s1, [#allocation1]  }
  0x8c   :  { %264 = dma.done.wait [#allocation1], 256  }
  0x8d   :  { %265 = vsyncadd [#allocation1], 4294967040 }
  0x8e   :  { %216 = vsyncpa [#allocation1], 1 }

// kernel: _lambda_.1
= control target key start
LH: loop header
LB: loop body
LE: loop exit
PB: predicated region body
PF: predicated region fallthrough
CT: control target
= control target key end

     0   :  { %s1016_s9 = smov 0   ;;  %s1018_s10 = smov 0   ;;  %s1392_s0 = inlined_call_operand.vmem [shape: f32[32,16,128], index: 0, kind: input, shape index: {}]   ;;  %s1393_s1 = inlined_call_operand.vmem [shape: f32[7,16,128], index: 1, kind: input, shape index: {}]   ;;  %s1394_s2 = inlined_call_operand.vmem [shape: f32[9,16,128], index: 2, kind: output, shape index: {}]  }
   0x1   :  { %s1020_s11 = smov 0  }
   0x2 LB: > { %s885_s12 = sadd.s32 4294967295, %s999_s11   ;;  %s1033_s13 = sadd.s32 1, %s999_s11   ;;  %s999_s11 = sphi %s1020_s11, %s1399_s11   ;;  %s995_s10 = sphi %s1018_s10, %s1398_s10   ;;  %s991_s9 = sphi %s1016_s9, %s1397_s9  }
   0x3   : > { %s16_s14 = ssub.s32 %s999_s11, %s1033_s13  ;;  %s19_s15 = sadd.s32 1, %s995_s10 }
   0x4   : > { %p17_p0 = scmp.eq.s32.totalorder %s16_s14, 0  ;;  %p26_p1 = scmp.ne.s32.totalorder %s995_s10, %s991_s9 }
   0x5   : > { %p27_p2 = scmp.eq.s32.totalorder %s999_s11, 0  ;;  %p82_p3 = scmp.eq.s32.totalorder %s885_s12, 1 }
   0x6   : > { %s1044_s16 = scalar_select %p17_p0, %s995_s10, %s19_s15  }
   0x7   : > { %p1046_p4 = por %p27_p2, %p26_p1  ;;  %p1050_p5 = por %p82_p3, %p26_p1 }
   0x8   : > { %p888_p6 = scmp.ge.s32.totalorder %s999_s11, 2 }
   0xa   : > { %104 = sbr.rel (%p888_p6) target bundleno = 43 (0x2b), region = 16 }
   0xf   : > { %107 = sbr.rel (!%p1046_p4) target bundleno = 35 (0x23), region = 20  ;;  %s109_s19 = sand.u32 (%p1046_p4), 1, %s995_s10  }
  0x10   : > { %s890_s20 = sshll.u32 (%p1046_p4), %s999_s11, 3  ;;  %s889_s21 = sshll.u32 (%p1046_p4), %s109_s19, 8 }
  0x11   : > { %s1062_s24 = scalar_lea.vmem (%p1046_p4), %s1392_s0, %s890_s20  ;;  %s1067_s25 = scalar_lea.vmem (%p1046_p4), [#allocation2], %s889_s21 }
  0x12   : > { %v204_v0 = vld [vmem:[%s1062_s24] sm:$0xff] (%p1046_p4)  ;;  %v206_v1 = vld [vmem:[%s1062_s24 + $0x10] sm:$0xff] (%p1046_p4) }
  0x13   : > { %v208_v2 = vld [vmem:[%s1062_s24 + $0x20] sm:$0xff] (%p1046_p4)  ;;  %205 = vst [vmem:[%s1067_s25] sm:$0xff] (%p1046_p4), %v204_v0  ;;  %207 = vst [vmem:[%s1067_s25 + $0x8] sm:$0xff] (%p1046_p4), %v206_v1  ;;  %v210_v3 = vld [vmem:[%s1062_s24 + $0x30] sm:$0xff] (%p1046_p4) }
  0x14   : > { %209 = vst [vmem:[%s1067_s25 + $0x10] sm:$0xff] %v208_v2  ;;  %v212_v4 = vld [vmem:[%s1062_s24 + $0x40] sm:$0xff]  ;;  %v214_v5 = vld [vmem:[%s1062_s24 + $0x50] sm:$0xff]  ;;  %211 = vst [vmem:[%s1067_s25 + $0x18] sm:$0xff] %v210_v3 }
  0x15   : > { %213 = vst [vmem:[%s1067_s25 + $0x20] sm:$0xff] %v212_v4  ;;  %215 = vst [vmem:[%s1067_s25 + $0x28] sm:$0xff] %v214_v5  ;;  %v216_v6 = vld [vmem:[%s1062_s24 + $0x60] sm:$0xff]  ;;  %v218_v7 = vld [vmem:[%s1062_s24 + $0x70] sm:$0xff] }
  0x16   : > { %v220_v8 = vld [vmem:[%s1062_s24 + $0x80] sm:$0xff]  ;;  %217 = vst [vmem:[%s1067_s25 + $0x30] sm:$0xff] %v216_v6  ;;  %219 = vst [vmem:[%s1067_s25 + $0x38] sm:$0xff] %v218_v7  ;;  %v222_v9 = vld [vmem:[%s1062_s24 + $0x90] sm:$0xff] }
  0x17   : > { %221 = vst [vmem:[%s1067_s25 + $0x40] sm:$0xff] %v220_v8  ;;  %v224_v10 = vld [vmem:[%s1062_s24 + $0xa0] sm:$0xff]  ;;  %v226_v11 = vld [vmem:[%s1062_s24 + $0xb0] sm:$0xff]  ;;  %223 = vst [vmem:[%s1067_s25 + $0x48] sm:$0xff] %v222_v9 }
  0x18   : > { %225 = vst [vmem:[%s1067_s25 + $0x50] sm:$0xff] %v224_v10  ;;  %227 = vst [vmem:[%s1067_s25 + $0x58] sm:$0xff] %v226_v11  ;;  %v228_v12 = vld [vmem:[%s1062_s24 + $0xc0] sm:$0xff]  ;;  %v230_v13 = vld [vmem:[%s1062_s24 + $0xd0] sm:$0xff] }
  0x19   : > { %v232_v14 = vld [vmem:[%s1062_s24 + $0xe0] sm:$0xff]  ;;  %229 = vst [vmem:[%s1067_s25 + $0x60] sm:$0xff] %v228_v12  ;;  %231 = vst [vmem:[%s1067_s25 + $0x68] sm:$0xff] %v230_v13  ;;  %v234_v15 = vld [vmem:[%s1062_s24 + $0xf0] sm:$0xff] }
  0x1a   : > { %233 = vst [vmem:[%s1067_s25 + $0x70] sm:$0xff] %v232_v14  ;;  %v236_v16 = vld [vmem:[%s1062_s24 + $0x100] sm:$0xff]  ;;  %v238_v17 = vld [vmem:[%s1062_s24 + $0x110] sm:$0xff]  ;;  %235 = vst [vmem:[%s1067_s25 + $0x78] sm:$0xff] %v234_v15 }
  0x1b   : > { %237 = vst [vmem:[%s1067_s25 + $0x80] sm:$0xff] %v236_v16  ;;  %239 = vst [vmem:[%s1067_s25 + $0x88] sm:$0xff] %v238_v17  ;;  %v240_v18 = vld [vmem:[%s1062_s24 + $0x120] sm:$0xff]  ;;  %v242_v19 = vld [vmem:[%s1062_s24 + $0x130] sm:$0xff] }
  0x1c   : > { %v244_v20 = vld [vmem:[%s1062_s24 + $0x140] sm:$0xff]  ;;  %241 = vst [vmem:[%s1067_s25 + $0x90] sm:$0xff] %v240_v18  ;;  %243 = vst [vmem:[%s1067_s25 + $0x98] sm:$0xff] %v242_v19  ;;  %v246_v21 = vld [vmem:[%s1062_s24 + $0x150] sm:$0xff] }
  0x1d   : > { %245 = vst [vmem:[%s1067_s25 + $0xa0] sm:$0xff] %v244_v20  ;;  %v248_v22 = vld [vmem:[%s1062_s24 + $0x160] sm:$0xff]  ;;  %v250_v23 = vld [vmem:[%s1062_s24 + $0x170] sm:$0xff]  ;;  %247 = vst [vmem:[%s1067_s25 + $0xa8] sm:$0xff] %v246_v21 }
  0x1e   : > { %249 = vst [vmem:[%s1067_s25 + $0xb0] sm:$0xff] %v248_v22  ;;  %251 = vst [vmem:[%s1067_s25 + $0xb8] sm:$0xff] %v250_v23  ;;  %v252_v24 = vld [vmem:[%s1062_s24 + $0x180] sm:$0xff]  ;;  %v254_v25 = vld [vmem:[%s1062_s24 + $0x190] sm:$0xff] }
  0x1f   : > { %v256_v26 = vld [vmem:[%s1062_s24 + $0x1a0] sm:$0xff]  ;;  %253 = vst [vmem:[%s1067_s25 + $0xc0] sm:$0xff] %v252_v24  ;;  %255 = vst [vmem:[%s1067_s25 + $0xc8] sm:$0xff] %v254_v25  ;;  %v258_v27 = vld [vmem:[%s1062_s24 + $0x1b0] sm:$0xff] }
  0x20   : > { %257 = vst [vmem:[%s1067_s25 + $0xd0] sm:$0xff] %v256_v26  ;;  %v260_v28 = vld [vmem:[%s1062_s24 + $0x1c0] sm:$0xff]  ;;  %v262_v29 = vld [vmem:[%s1062_s24 + $0x1d0] sm:$0xff]  ;;  %259 = vst [vmem:[%s1067_s25 + $0xd8] sm:$0xff] %v258_v27 }
  0x21   : > { %261 = vst [vmem:[%s1067_s25 + $0xe0] sm:$0xff] %v260_v28  ;;  %263 = vst [vmem:[%s1067_s25 + $0xe8] sm:$0xff] %v262_v29  ;;  %v264_v30 = vld [vmem:[%s1062_s24 + $0x1e0] sm:$0xff]  ;;  %v266_v31 = vld [vmem:[%s1062_s24 + $0x1f0] sm:$0xff] }
  0x22   : > { %265 = vst [vmem:[%s1067_s25 + $0xf0] sm:$0xff] %v264_v30  ;;  %267 = vst [vmem:[%s1067_s25 + $0xf8] sm:$0xff] %v266_v31 }
  0x23 PF: > { %273 = sbr.rel (!%p1046_p4) target bundleno = 43 (0x2b), region = 58  ;;  %s275_s26 = sand.u32 (%p1046_p4), 1, %s995_s10  }
  0x24   : > { %s891_s27 = sshll.u32 (%p1046_p4), %s999_s11, 3  ;;  %s942_s28 = smul.u32 (%p1046_p4), 56, %s275_s26 }
  0x25   : > { %s279_s3 = scalar_lea.vmem (%p1046_p4), %s1393_s1, %s891_s27 }
  0x26   : > { %v320_v32 = vld [vmem:[%s279_s3] sm:$0xff] (%p1046_p4)  ;;  %v322_v33 = vld [vmem:[%s279_s3 + $0x10] sm:$0xff] (%p1046_p4)  ;;  %s277_s4 = scalar_lea.vmem (%p1046_p4), [#allocation3], %s942_s28 }
  0x27   : > { %v324_v34 = vld [vmem:[%s279_s3 + $0x20] sm:$0xff] (%p1046_p4)  ;;  %v326_v35 = vld [vmem:[%s279_s3 + $0x30] sm:$0xff] (%p1046_p4)  ;;  %321 = vst [vmem:[%s277_s4] sm:$0xff] (%p1046_p4), %v320_v32  ;;  %323 = vst [vmem:[%s277_s4 + $0x8] sm:$0xff] (%p1046_p4), %v322_v33 }
  0x28   : > { %v328_v36 = vld [vmem:[%s279_s3 + $0x40] sm:$0xff]  ;;  %v330_v37 = vld [vmem:[%s279_s3 + $0x50] sm:$0xff]  ;;  %325 = vst [vmem:[%s277_s4 + $0x10] sm:$0xff] %v324_v34  ;;  %327 = vst [vmem:[%s277_s4 + $0x18] sm:$0xff] %v326_v35 }
  0x29   : > { %329 = vst [vmem:[%s277_s4 + $0x20] sm:$0xff] %v328_v36  ;;  %331 = vst [vmem:[%s277_s4 + $0x28] sm:$0xff] %v330_v37  ;;  %v332_v38 = vld [vmem:[%s279_s3 + $0x60] sm:$0xff] }
  0x2a   : > { %333 = vst [vmem:[%s277_s4 + $0x30] sm:$0xff] %v332_v38 }
  0x2b PF: > { %p892_p7 = scmp.ge.s32.totalorder %s999_s11, 1  ;;  %p338_p8 = scmp.lt.s32.totalorder %s999_s11, 3 }
  0x2d   : > { %p339_p9 = pnand %p892_p7, %p338_p8 }
  0x2e   : > { %s1140_s5 = sand.u32 (!%p339_p9), 1, %s991_s9  }
  0x2f   : > { %342 = sbr.rel (%p339_p9) target bundleno = 178 (0xb2), region = 96  ;;  %s893_s7 = sshll.u32 (!%p339_p9), %s1140_s5, 8 }
  0x30   : > { %s943_s6 = smul.u32 (!%p339_p9), 56, %s1140_s5  ;;  %s1180_s9 = scalar_lea.vmem (!%p339_p9), [#allocation2], %s893_s7 }
  0x31   : > { %s944_s14 = smul.u32 (!%p339_p9), 72, %s1140_s5 }
  0x32   : > { %s1144_s8 = scalar_lea.vmem (!%p339_p9), [#allocation3], %s943_s6 }
  0x33   : > { %s1306_s15 = scalar_lea.vmem (!%p339_p9), [#allocation4], %s944_s14 }
  0x34   : > { %v1147_v39 = vld [vmem:[%s1144_s8] sm:$0xff]  ;;  %v1150_v40 = vld [vmem:[%s1144_s8 + $0x8] sm:$0xff]  ;;  %v1153_v41 = vld [vmem:[%s1144_s8 + $0x10] sm:$0xff]  ;;  %s939_s17 = sshll.u32 (%p1050_p5), %s885_s12, 3 }
  0x35   : > { %v1156_v42 = vsub.f32 1.0, %v1150_v40  ;;  %v1159_v43 = vsub.f32 1.0, %v1153_v41  ;;  %v1162_v44 = vsub.f32 1.0, %v1147_v39  ;;  %v1166_v45 = vmul.f32 %v1153_v41, %v1150_v40  ;;  %v1183_v49 = vld [vmem:[%s1180_s9] sm:$0xff]  ;;  %v1186_v50 = vld [vmem:[%s1180_s9 + $0x8] sm:$0xff]  ;;  %v1202_v56 = vld [vmem:[%s1180_s9 + $0x10] sm:$0xff]  ;;  %s700_s18 = scalar_lea.vmem (%p1050_p5), %s1394_s2, %s939_s17 }
  0x36   : > { %v900_v53 = vld [vmem:[%s1180_s9 + $0x40] sm:$0xff]  ;;  %v1207_v58 = vld [vmem:[%s1180_s9 + $0x18] sm:$0xff]  ;;  %v904_v59 = vld [vmem:[%s1180_s9 + $0x48] sm:$0xff] }
  0x37   : > { %v1170_v46 = vmul.f32 %v1159_v43, %v1156_v42  ;;  %v1174_v47 = vmul.f32 %v1153_v41, %v1156_v42  ;;  %v1178_v48 = vmul.f32 %v1150_v40, %v1159_v43  ;;  %v1190_v51 = vmul.f32 %v1166_v45, %v1162_v44  ;;  %v1211_v60 = vld [vmem:[%s1180_s9 + $0x20] sm:$0xff]  ;;  %v1218_v62 = vld [vmem:[%s1180_s9 + $0x28] sm:$0xff]  ;;  %v908_v1 = vld [vmem:[%s1180_s9 + $0x50] sm:$0xff] }
  0x38   : > { %v1194_v52 = vmul.f32 %v1166_v45, %v1147_v39  ;;  %v514_v2 = vsub.f32 0.0, %v1166_v45  ;;  %v1234_v6 = vld [vmem:[%s1180_s9 + $0x30] sm:$0xff]  ;;  %v1237_v7 = vld [vmem:[%s1180_s9 + $0x38] sm:$0xff]  ;;  %v916_v10 = vld [vmem:[%s1180_s9 + $0x60] sm:$0xff]  ;;  %v1252_v17 = vmul.f32 %v1159_v43, %v1162_v44 }
  0x39   : > { %v420_v54 = vmul.f32 %v1170_v46, %v1162_v44  ;;  %v449_v55 = vmul.f32 %v1174_v47, %v1162_v44  ;;  %v477_v57 = vmul.f32 %v1178_v48, %v1162_v44  ;;  %v1215_v61 = vmul.f32 %v1170_v46, %v1147_v39  ;;  %v912_v9 = vld [vmem:[%s1180_s9 + $0x58] sm:$0xff]  ;;  %v901_v14 = vld [vmem:[%s1180_s9 + $0x80] sm:$0xff]  ;;  %v905_v15 = vld [vmem:[%s1180_s9 + $0x88] sm:$0xff] }
  0x3a   : > { %v1222_v63 = vmul.f32 %v1174_v47, %v1147_v39  ;;  %v1226_v0 = vmul.f32 %v1178_v48, %v1147_v39  ;;  %v506_v11 = vmul.f32 %v1207_v58, %v1190_v51  ;;  %v1245_v12 = vmul.f32 %v1237_v7, %v1194_v52  ;;  %v909_v16 = vld [vmem:[%s1180_s9 + $0x90] sm:$0xff]  ;;  %v920_v22 = vld [vmem:[%s1180_s9 + $0x68] sm:$0xff]  ;;  %v928_v24 = vld [vmem:[%s1180_s9 + $0x78] sm:$0xff] }
  0x3b   : > { %v421_v3 = vmul.f32 %v420_v54, %v1183_v49  ;;  %v450_v4 = vmul.f32 %v1186_v50, %v449_v55  ;;  %v478_v5 = vmul.f32 %v1202_v56, %v477_v57  ;;  %v423_v8 = vmul.f32 %v900_v53, %v420_v54  ;;  %v924_v23 = vld [vmem:[%s1180_s9 + $0x70] sm:$0xff]  ;;  %v913_v29 = vld [vmem:[%s1180_s9 + $0x98] sm:$0xff]  ;;  %v917_v30 = vld [vmem:[%s1180_s9 + $0xa0] sm:$0xff] }
  0x3c   : > { %v452_v13 = vmul.f32 %v904_v59, %v449_v55  ;;  %v533_v19 = vmul.f32 %v1211_v60, %v1215_v61  ;;  %v561_v20 = vmul.f32 %v1218_v62, %v1222_v63  ;;  %v480_v21 = vmul.f32 %v908_v1, %v477_v57  ;;  %v902_v35 = vld [vmem:[%s1180_s9 + $0xc0] sm:$0xff]  ;;  %v906_v36 = vld [vmem:[%s1180_s9 + $0xc8] sm:$0xff]  ;;  %v910_v37 = vld [vmem:[%s1180_s9 + $0xd0] sm:$0xff] }
  0x3d   : > { %v451_v18 = vadd.f32 %v450_v4, %v421_v3  ;;  %v588_v25 = vmul.f32 %v1234_v6, %v1226_v0  ;;  %v508_v27 = vmul.f32 %v912_v9, %v1190_v51  ;;  %v535_v28 = vmul.f32 %v916_v10, %v1215_v61  ;;  %v921_v3 = vld [vmem:[%s1180_s9 + $0xa8] sm:$0xff]  ;;  %v925_v4 = vld [vmem:[%s1180_s9 + $0xb0] sm:$0xff] }
  0x3e   : > { %v453_v26 = vadd.f32 %v452_v13, %v423_v8  ;;  %v425_v32 = vmul.f32 %v901_v14, %v420_v54  ;;  %v454_v33 = vmul.f32 %v905_v15, %v449_v55  ;;  %v482_v34 = vmul.f32 %v909_v16, %v477_v57  ;;  %v929_v13 = vld [vmem:[%s1180_s9 + $0xb8] sm:$0xff] }
  0x3f   : > { %v479_v31 = vadd.f32 %v478_v5, %v451_v18  ;;  %v563_v53 = vmul.f32 %v920_v22, %v1222_v63  ;;  %v590_v59 = vmul.f32 %v924_v23, %v1226_v0  ;;  %v618_v1 = vmul.f32 %v928_v24, %v1194_v52  ;;  %v914_v14 = vld [vmem:[%s1180_s9 + $0xd8] sm:$0xff]  ;;  %v918_v22 = vld [vmem:[%s1180_s9 + $0xe0] sm:$0xff] }
  0x40   : > { %v481_v38 = vadd.f32 %v480_v21, %v453_v26  ;;  %v455_v8 = vadd.f32 %v454_v33, %v425_v32  ;;  %v510_v9 = vmul.f32 %v913_v29, %v1190_v51  ;;  %v537_v10 = vmul.f32 %v917_v30, %v1215_v61 }
  0x41   : > { %v507_v5 = vadd.f32 %v506_v11, %v479_v31  ;;  %v427_v16 = vmul.f32 %v902_v35, %v420_v54  ;;  %v456_v18 = vmul.f32 %v906_v36, %v449_v55  ;;  %v484_v21 = vmul.f32 %v910_v37, %v477_v57  ;;  %v926_v35 = vld [vmem:[%s1180_s9 + $0xf0] sm:$0xff]  ;;  %v930_v36 = vld [vmem:[%s1180_s9 + $0xf8] sm:$0xff] }
  0x42   : > { %v509_v15 = vadd.f32 %v508_v27, %v481_v38  ;;  %v483_v24 = vadd.f32 %v482_v34, %v455_v8  ;;  %v565_v26 = vmul.f32 %v921_v3, %v1222_v63  ;;  %v592_v11 = vmul.f32 %v925_v4, %v1226_v0  ;;  %v922_v27 = vld [vmem:[%s1180_s9 + $0xe8] sm:$0xff] }
  0x43   : > { %v534_v23 = vadd.f32 %v533_v19, %v507_v5  ;;  %v620_v30 = vmul.f32 %v929_v13, %v1194_v52  ;;  %v457_v31 = vadd.f32 %v456_v18, %v427_v16  ;;  %v512_v32 = vmul.f32 %v914_v14, %v1190_v51 }
  0x44   : > { %v536_v29 = vadd.f32 %v535_v28, %v509_v15  ;;  %v511_v55 = vadd.f32 %v510_v9, %v483_v24  ;;  %v539_v57 = vmul.f32 %v918_v22, %v1215_v61  ;;  %v429_v19 = vsub.f32 0.0, %v1170_v46 }
  0x45   : > { %v562_v54 = vadd.f32 %v561_v20, %v534_v23  ;;  %v485_v34 = vadd.f32 %v484_v21, %v457_v31  ;;  %v458_v37 = vsub.f32 0.0, %v1174_v47  ;;  %v486_v28 = vsub.f32 0.0, %v1178_v48 }
  0x46   : > { %v564_v33 = vadd.f32 %v563_v53, %v536_v29  ;;  %v538_v3 = vadd.f32 %v537_v10, %v511_v55  ;;  %v567_v51 = vmul.f32 %v922_v27, %v1222_v63  ;;  %v430_v20 = vmul.f32 %v429_v19, %v1183_v49 }
  0x47   : > { %v589_v38 = vadd.f32 %v588_v25, %v562_v54  ;;  %v513_v5 = vadd.f32 %v512_v32, %v485_v34  ;;  %v459_v61 = vmul.f32 %v1186_v50, %v458_v37  ;;  %v487_v53 = vmul.f32 %v1202_v56, %v486_v28 }
  0x48   : > { %v591_v4 = vadd.f32 %v590_v59, %v564_v33  ;;  %v566_v9 = vadd.f32 %v565_v26, %v538_v3  ;;  %v594_v13 = vmul.f32 %v926_v35, %v1226_v0  ;;  %v622_v25 = vmul.f32 %v930_v36, %v1194_v52 }
  0x49   : > { %v1297_v8 = vadd.f32 %v1245_v12, %v589_v38  ;;  %v540_v10 = vadd.f32 %v539_v57, %v513_v5  ;;  %v460_v15 = vadd.f32 %v459_v61, %v430_v20  ;;  %v515_v63 = vmul.f32 %v1207_v58, %v514_v2 }
  0x4a   : > { %v619_v14 = vadd.f32 %v618_v1, %v591_v4  ;;  %v593_v12 = vadd.f32 %v592_v11, %v566_v9  ;;  %v541_v52 = vmul.f32 %v1211_v60, %v1170_v46  ;;  %v403_v0 = vmul.f32 %v1153_v41, %v1162_v44 }
  0x4b   : > { %675 = vst [vmem:[%s1306_s15] sm:$0xff] %v1297_v8  ;;  %v633_v59 = vand.u32 2147483647, %v1297_v8  ;;  %v568_v1 = vadd.f32 %v567_v51, %v540_v10  ;;  %v488_v2 = vadd.f32 %v487_v53, %v460_v15  ;;  %v404_v16 = vmul.f32 %v1159_v43, %v1147_v39 }
  0x4c   : > { %931 = vst [vmem:[%s1306_s15 + $0x8] sm:$0xff] %v619_v14  ;;  %v432_v18 = vsub.f32 0.0, %v1252_v17  ;;  %v621_v21 = vadd.f32 %v620_v30, %v593_v12  ;;  %v405_v23 = vmul.f32 %v1153_v41, %v1147_v39  ;;  %v461_v24 = vsub.f32 0.0, %v403_v0 }
  0x4d   : > { %v634_v22 = vsub.f32 0.0, %v633_v59  ;;  %v595_v26 = vadd.f32 %v594_v13, %v568_v1  ;;  %v516_v11 = vadd.f32 %v515_v63, %v488_v2  ;;  %v569_v46 = vmul.f32 %v1218_v62, %v1174_v47 }
  0x4e   : > { %v433_v29 = vmul.f32 %v432_v18, %v1183_v49  ;;  %932 = vst [vmem:[%s1306_s15 + $0x10] sm:$0xff] %v621_v21  ;;  %v462_v43 = vmul.f32 %v1186_v50, %v461_v24  ;;  %v489_v30 = vmul.f32 %v1202_v56, %v1252_v17  ;;  %v543_v32 = vsub.f32 0.0, %v404_v16 }
  0x4f   : > { %v635_v31 = vmul.f32 9.99001, %v634_v22  ;;  %v623_v27 = vadd.f32 %v622_v25, %v595_v26  ;;  %v542_v54 = vadd.f32 %v541_v52, %v516_v11  ;;  %v596_v41 = vmul.f32 %v1234_v6, %v1178_v48  ;;  %v898_v26 = vld [vmem:[%s1144_s8 + $0x28] sm:$0xff] }
  0x50   : > { %v624_v55 = vmul.f32 %v1237_v7, %v1166_v45  ;;  %v463_v47 = vadd.f32 %v462_v43, %v433_v29  ;;  %v517_v19 = vmul.f32 %v1207_v58, %v403_v0  ;;  %v571_v33 = vsub.f32 0.0, %v405_v23  ;;  %v896_v0 = vld [vmem:[%s1144_s8 + $0x18] sm:$0xff] }
  0x51   : > { %v636_v57 = vmul.f32 1.442695, %v635_v31  ;;  %933 = vst [vmem:[%s1306_s15 + $0x18] sm:$0xff] %v623_v27  ;;  %v570_v34 = vadd.f32 %v569_v46, %v542_v54  ;;  %v406_v35 = vmul.f32 %v1156_v42, %v1162_v44  ;;  %v407_v17 = vmul.f32 %v1150_v40, %v1162_v44 }
  0x52   : > { %v408_v36 = vmul.f32 %v1156_v42, %v1147_v39  ;;  %v490_v48 = vadd.f32 %v489_v30, %v463_v47  ;;  %v544_v45 = vmul.f32 %v1211_v60, %v543_v32  ;;  %v572_v20 = vmul.f32 %v1218_v62, %v571_v33 }
  0x53   : > { %969 = vpow2.f32 %v636_v57  ;;  %v597_v37 = vadd.f32 %v596_v41, %v570_v34  ;;  %v435_v28 = vsub.f32 0.0, %v406_v35  ;;  %v464_v38 = vmul.f32 %v1186_v50, %v406_v35  ;;  %v899_v57 = vld [vmem:[%s1144_s8 + $0x30] sm:$0xff] }
  0x54   : > { %v491_v3 = vsub.f32 0.0, %v407_v17  ;;  %v518_v51 = vadd.f32 %v517_v19, %v490_v48  ;;  %v409_v4 = vmul.f32 %v1150_v40, %v1147_v39  ;;  %v546_v61 = vsub.f32 0.0, %v408_v36 }
  0x55   : > { %v625_v44 = vadd.f32 %v624_v55, %v597_v37  ;;  %v436_v5 = vmul.f32 %v435_v28, %v1183_v49  ;;  %v598_v9 = vmul.f32 %v1234_v6, %v404_v16  ;;  %v519_v25 = vmul.f32 %v1207_v58, %v407_v17  ;;  %v897_v58 = vld [vmem:[%s1144_s8 + $0x20] sm:$0xff] }
  0x56   : > { %v492_v42 = vmul.f32 %v1202_v56, %v491_v3  ;;  %v545_v53 = vadd.f32 %v544_v45, %v518_v51  ;;  %v626_v10 = vmul.f32 %v1237_v7, %v405_v23  ;;  %v547_v40 = vmul.f32 %v1211_v60, %v546_v61 }
  0x57   : > { %v630_v13 = vmul.f32 3.75, %v625_v44  ;;  %v465_v50 = vadd.f32 %v464_v38, %v436_v5  ;;  %v600_v49 = vsub.f32 0.0, %v409_v4  ;;  %v574_v63 = vmul.f32 %v1218_v62, %v408_v36 }
  0x58   : > { %v573_v14 = vadd.f32 %v572_v20, %v545_v53  ;;  %v628_v18 = vmul.f32 %v1237_v7, %v409_v4  ;;  %vm638_vm0 = vcmp.ge.f32.partialorder %v1297_v8, 0.0  ;;  %v747_v53 = vld [vmem:[%s1306_s15 + $0x8] sm:$0xff] (%p1050_p5) }
  0x59   : > { %935 = vst [vmem:[%s1306_s15 + $0x28] sm:$0xff] %v630_v13  ;;  %v493_v39 = vadd.f32 %v492_v42, %v465_v50  ;;  %v601_v52 = vmul.f32 %v1234_v6, %v600_v49  ;;  %v643_v21 = vmul.f32 %v896_v0, %v630_v13  ;;  %v751_v13 = vld [vmem:[%s1306_s15 + $0x18] sm:$0xff] (%p1050_p5)  ;;  %748 = vst [vmem:[%s700_s18 + $0x10] sm:$0xff] (%p1050_p5), %v747_v53 }
  0x5a   : > { %v599_v56 = vadd.f32 %v598_v9, %v573_v14  ;;  %v749_v9 = vld [vmem:[%s1306_s15 + $0x10] sm:$0xff] (%p1050_p5)  ;;  %752 = vst [vmem:[%s700_s18 + $0x30] sm:$0xff] (%p1050_p5), %v751_v13 }
  0x5b   : > { %v520_v15 = vadd.f32 %v519_v25, %v493_v39  ;;  %750 = vst [vmem:[%s700_s18 + $0x20] sm:$0xff] (%p1050_p5), %v749_v9 }
  0x5c   : > { %v627_v12 = vadd.f32 %v626_v10, %v599_v56 }
  0x5d   : > { %v548_v59 = vadd.f32 %v547_v40, %v520_v15 }
  0x5e   : > { %v631_v1 = vmul.f32 3.75, %v627_v12 }
  0x5f   : > { %v575_v16 = vadd.f32 %v574_v63, %v548_v59 }
  0x60   : > { %v970_v2 = vpop.eup %969  ;;  %936 = vst [vmem:[%s1306_s15 + $0x30] sm:$0xff] %v631_v1  ;;  %v644_v62 = vmul.f32 %v897_v58, %v631_v1  ;;  %v755_v25 = vld [vmem:[%s1306_s15 + $0x28] sm:$0xff] (%p1050_p5) }
  0x61   : > { %v639_v60 = vmul.f32 0.5, %v970_v2  ;;  %v602_v22 = vadd.f32 %v601_v52, %v575_v16  ;;  %756 = vst [vmem:[%s700_s18 + $0x50] sm:$0xff] (%p1050_p5), %v755_v25 }
  0x62   : > { %v645_v46 = vadd.f32 %v644_v62, %v643_v21 }
  0x63   : > { %v640_v23 = vsub.f32 1.0, %v639_v60  ;;  %v629_v24 = vadd.f32 %v628_v18, %v602_v22 }
  0x65   : > { %v641_v6 = vsel %vm638_vm0, %v639_v60, %v640_v23  ;;  %v632_v29 = vmul.f32 3.5, %v629_v24 }
  0x66   : > { %v642_v11 = vmul.f32 9.99001, %v641_v6 }
  0x67   : > { %v646_v31 = vmul.f32 %v898_v26, %v632_v29  ;;  %937 = vst [vmem:[%s1306_s15 + $0x38] sm:$0xff] %v632_v29  ;;  %v757_v14 = vld [vmem:[%s1306_s15 + $0x30] sm:$0xff] (%p1050_p5) }
  0x68   : > { %934 = vst [vmem:[%s1306_s15 + $0x20] sm:$0xff] %v642_v11  ;;  %758 = vst [vmem:[%s700_s18 + $0x60] sm:$0xff] (%p1050_p5), %v757_v14 }
  0x69   : > { %v647_v7 = vadd.f32 %v646_v31, %v645_v46 }
  0x6b   : > { %v648_v43 = vsub.f32 0.0, %v647_v7 }
  0x6d   : > { %v649_v30 = vmul.f32 0.5, %v648_v43  ;;  %v653_v54 = vmax.f32 %v648_v43, 0.0 }
  0x6e   : > { %v759_v10 = vld [vmem:[%s1306_s15 + $0x38] sm:$0xff] (%p1050_p5) }
  0x6f   : > { %v650_v32 = vadd.f32 0.5, %v649_v30  ;;  %v753_v50 = vld [vmem:[%s1306_s15 + $0x20] sm:$0xff] (%p1050_p5)  ;;  %760 = vst [vmem:[%s700_s18 + $0x70] sm:$0xff] (%p1050_p5), %v759_v10 }
  0x70   : > { %754 = vst [vmem:[%s700_s18 + $0x40] sm:$0xff] (%p1050_p5), %v753_v50 }
  0x71   : > { %v651_v27 = vmax.f32 %v650_v32, 0.0 }
  0x73   : > { %v652_v41 = vmul.f32 0.0, %v651_v27 }
  0x75   : > { %v654_v55 = vadd.f32 %v653_v54, %v652_v41 }
  0x77   : > { %v655_v47 = vsub.f32 0.0, %v654_v55 }
  0x79   : > { %v656_v19 = vmul.f32 %v899_v57, %v655_v47 }
  0x7b   : > { %v657_v33 = vmul.f32 0.5, %v656_v19 }
  0x7d   : > { %v658_v34 = vadd.f32 %v657_v33, %v1297_v8  ;;  %v659_v35 = vsub.f32 %v1297_v8, %v657_v33  ;;  %v745_v8 = vld [vmem:[%s1306_s15] sm:$0xff] (%p1050_p5) }
  0x7e   : > { %746 = vst [vmem:[%s700_s18] sm:$0xff] (%p1050_p5), %v745_v8 }
  0x7f   : > { %v660_v17 = vmul.f32 1.3591409, %v659_v35  ;;  %v664_v36 = vmul.f32 1.3591409, %v658_v34 }
  0x81   : > { %971 = vtanh.f32 %v660_v17 }
  0x82   : > { %973 = vtanh.f32 %v664_v36 }
  0x8e   : > { %v972_v48 = vpop.eup %971 }
  0x8f   : > { %v974_v45 = vpop.eup %973  ;;  %v662_v37 = vmul.f32 0.5, %v972_v48 }
  0x90   : > { %v666_v28 = vmul.f32 0.5, %v974_v45 }
  0x91   : > { %v663_v38 = vadd.f32 0.5, %v662_v37 }
  0x92   : > { %v667_v3 = vadd.f32 0.5, %v666_v28 }
  0x93   : > { %v670_v51 = vadd.f32 1e-05, %v663_v38 }
  0x94   : > { %v668_v20 = vsub.f32 %v663_v38, %v667_v3 }
  0x95   : > { %975 = vrcp.f32 %v670_v51 }
  0x96   : > { %v669_v4 = vadd.f32 1e-05, %v668_v20 }
  0xa2   : > { %v976_v44 = vpop.eup %975 }
  0xa3   : > { %v672_v5 = vmul.f32 %v976_v44, %v669_v4 }
  0xa5   : > { %v673_v42 = vmax.f32 %v672_v5, 0.0  ;;  %698 = sbr.rel (!%p1050_p5) target bundleno = 178 (0xb2), region = 108 }
  0xa7   : > { %v674_v61 = vmin.f32 %v673_v42, 1.0 }
  0xa9   : > { %938 = vst [vmem:[%s1306_s15 + $0x40] sm:$0xff] %v674_v61 }
  0xb0   : > { %v761_v39 = vld [vmem:[%s1306_s15 + $0x40] sm:$0xff] }
  0xb1   : > { %762 = vst [vmem:[%s700_s18 + $0x80] sm:$0xff] %v761_v39 }
  0xb2 PF: > { %p9_p10 = scmp.ge.s32.totalorder %s1033_s13, 4   ;;  %s1397_s9 = smov %s995_s10 }
  0xb3   : > { %s1398_s10 = smov %s1044_s16  ;;  %s1399_s11 = smov %s1033_s13 }
  0xb4   :  { %11 = sbr.rel (!%p9_p10) target bundleno = 2 (0x2), region = 230 }

</bundles_post_ra>
